<compile_context>
chip_gen: v7x
topology: tpu7x:2x2x1
jax: 0.10.0
libtpu: 0.0.40
codegen_flags: <defaults>
</compile_context>

<pallas_src>
import functools

import jax
import jax.numpy as jnp
from jax.experimental import pallas as pl
from jax.experimental.pallas import tpu as pltpu

EPS = 1e-5  # torch.nn.BatchNorm1d default


def _round_up(x, m):
    return (x + m - 1) // m * m


# ----------------------------------------------------------------------------
# In-kernel conv for one L-tile: y[l,:] = sum_t x_pad[l0+l+t, :] @ W[t]
# (cross-correlation, PyTorch Conv1d convention).  MXU operands bf16, f32 acc.
# ----------------------------------------------------------------------------
def _conv_taps(x_ref, w_ref, l0, tile_l, k, cp, compute_dtype):
    acc = jnp.zeros((tile_l, cp), jnp.float32)
    for t in range(k):  # K=11 static taps, unrolled at trace time
        xs = x_ref[0, pl.ds(l0 + t, tile_l), :].astype(compute_dtype)
        acc = acc + jnp.dot(xs, w_ref[t], preferred_element_type=jnp.float32)
    return acc


# ----------------------------------------------------------------------------
# Pass A: conv + bias, accumulate per-channel sum / sumsq across the grid.
# ----------------------------------------------------------------------------
def _conv_stats_kernel(x_ref, w_ref, b_ref, stats_ref, *, k, tile_l, l_out,
                       compute_dtype):
    n_i = pl.program_id(0)
    l_i = pl.program_id(1)

    @pl.when((n_i == 0) & (l_i == 0))
    def _init():
        stats_ref[...] = jnp.zeros_like(stats_ref)

    cp = stats_ref.shape[1]
    l0 = pl.multiple_of(l_i * tile_l, 8)
    y = _conv_taps(x_ref, w_ref, l0, tile_l, k, cp, compute_dtype) + b_ref[...]

    # Mask rows that only exist due to L-tile padding so they don't pollute
    # the batch statistics.
    row = l0 + jax.lax.broadcasted_iota(jnp.int32, y.shape, 0)
    y = jnp.where(row < l_out, y, 0.0)
    stats_ref[0:1, :] += jnp.sum(y, axis=0, keepdims=True)
    stats_ref[1:2, :] += jnp.sum(y * y, axis=0, keepdims=True)


# ----------------------------------------------------------------------------
# Pass B: recompute conv, normalize with global stats, affine, ReLU.
# ----------------------------------------------------------------------------
def _conv_bn_relu_kernel(x_ref, w_ref, b_ref, stats_ref, g_ref, beta_ref,
                         o_ref, *, k, tile_l, inv_count, compute_dtype):
    l_i = pl.program_id(1)
    cp = o_ref.shape[2]
    l0 = pl.multiple_of(l_i * tile_l, 8)
    y = _conv_taps(x_ref, w_ref, l0, tile_l, k, cp, compute_dtype) + b_ref[...]

    mean = stats_ref[0:1, :] * inv_count
    var = jnp.maximum(stats_ref[1:2, :] * inv_count - mean * mean, 0.0)
    scale = g_ref[...] * jax.lax.rsqrt(var + EPS)
    shift = beta_ref[...] - mean * scale
    o_ref[0, :, :] = jnp.maximum(y * scale + shift, 0.0)


# ----------------------------------------------------------------------------
# One Encoder layer.
# ----------------------------------------------------------------------------
def conv_bn_relu(x_nlc, w_oik, b, gamma, beta, padding, *, tile_l=256,
                 compute_dtype=jnp.bfloat16):
    """x_nlc: (N, L, C_in) f32; w_oik: (C_out, C_in, K) (PyTorch layout)."""
    n, length, c_in = x_nlc.shape
    c_out, _, k = w_oik.shape
    l_out = length + 2 * padding - k + 1
    assert l_out >= 1

    cp = _round_up(c_out, 128)                      # lane-dense output channels
    tl = max(8, min(_round_up(tile_l, 8), _round_up(l_out, 8)))
    l_out_pad = _round_up(l_out, tl)
    n_l_tiles = l_out_pad // tl
    l_in_p = l_out_pad + k - 1                      # halo-extended input length

    # Conv "same" zero padding + tile-overrun padding (all plain-JAX glue).
    xp = jnp.pad(x_nlc.astype(jnp.float32),
                 ((0, 0), (padding, l_in_p - length - padding), (0, 0)))
    w_kio = jnp.transpose(w_oik, (2, 1, 0))         # (K, C_in, C_out)
    w_kio = jnp.pad(w_kio, ((0, 0), (0, 0), (0, cp - c_out))).astype(compute_dtype)
    b2 = jnp.pad(b, (0, cp - c_out)).reshape(1, cp).astype(jnp.float32)
    g2 = jnp.pad(gamma, (0, cp - c_out)).reshape(1, cp).astype(jnp.float32)
    be2 = jnp.pad(beta, (0, cp - c_out)).reshape(1, cp).astype(jnp.float32)

    # x block = the whole padded sequence of one example (re-fetched only when
    # the example index changes); output/L tiles index into it with pl.ds.
    x_spec = pl.BlockSpec((1, l_in_p, c_in), lambda ni, li: (ni, 0, 0))
    w_spec = pl.BlockSpec((k, c_in, cp), lambda ni, li: (0, 0, 0))
    vec_spec = pl.BlockSpec((1, cp), lambda ni, li: (0, 0))
    stats_spec = pl.BlockSpec((2, cp), lambda ni, li: (0, 0))

    # Pass A: resident stats accumulator across the whole grid -> "arbitrary".
    stats = pl.pallas_call(
        functools.partial(_conv_stats_kernel, k=k, tile_l=tl, l_out=l_out,
                          compute_dtype=compute_dtype),
        out_shape=jax.ShapeDtypeStruct((2, cp), jnp.float32),
        grid=(n, n_l_tiles),
        in_specs=[x_spec, w_spec, vec_spec],
        out_specs=stats_spec,
        compiler_params=pltpu.CompilerParams(
            dimension_semantics=("arbitrary", "arbitrary")),
    )(xp, w_kio, b2)

    # Pass B: recompute conv + normalize + affine + ReLU; fully parallel.
    out = pl.pallas_call(
        functools.partial(_conv_bn_relu_kernel, k=k, tile_l=tl,
                          inv_count=1.0 / float(n * l_out),
                          compute_dtype=compute_dtype),
        out_shape=jax.ShapeDtypeStruct((n, l_out_pad, cp), jnp.float32),
        grid=(n, n_l_tiles),
        in_specs=[x_spec, w_spec, vec_spec, stats_spec, vec_spec, vec_spec],
        out_specs=pl.BlockSpec((1, tl, cp), lambda ni, li: (ni, li, 0)),
        compiler_params=pltpu.CompilerParams(
            dimension_semantics=("parallel", "parallel")),
    )(xp, w_kio, b2, stats, g2, be2)

    return out[:, :l_out, :c_out]


def encoder_forward(x_ncl, params, padding, *, tile_l=256):
    """Full Encoder forward. x_ncl: (N, C_in, L) -> (N, C_out, L_out)."""
    y = jnp.transpose(x_ncl, (0, 2, 1))   # NCL -> NLC
    for (w, b, gamma, beta) in params:
        y = conv_bn_relu(y, w, b, gamma, beta, padding, tile_l=tile_l)
    return jnp.transpose(y, (0, 2, 1))    # NLC -> NCL


def init_encoder_params(key, input_channels, hidden_channels, output_channels,
                        num_hidden_layers, kernel_size):
    # The original module's output_layer BatchNorm1d has hidden_channels
    # features, so it is only runnable when they match.
    assert output_channels == hidden_channels, \
        "Encoder.output_layer BatchNorm1d requires output_channels == hidden_channels"
    dims = ([(input_channels, hidden_channels)]
            + [(hidden_channels, hidden_channels)] * num_hidden_layers
            + [(hidden_channels, output_channels)])
    params = []
    for (ci, co) in dims:
        key, k1, k2, k3, k4 = jax.random.split(key, 5)
        bound = 1.0 / (ci * kernel_size) ** 0.5
        w = jax.random.uniform(k1, (co, ci, kernel_size), jnp.float32, -bound, bound)
        b = jax.random.uniform(k2, (co,), jnp.float32, -bound, bound)
        gamma = jax.random.uniform(k3, (co,), jnp.float32, 0.5, 1.5)
        beta = jax.random.uniform(k4, (co,), jnp.float32, -0.5, 0.5)
        params.append((w, b, gamma, beta))
    return params


def _reference_forward(x_ncl, params, padding, quantize_matmul=False):
    """Pure-JAX reference mirroring PyTorch semantics (lax.conv, f32).
    quantize_matmul=True additionally rounds conv operands to bf16 (what the
    kernel's MXU path does) while keeping f32 accumulation."""
    y = x_ncl
    for (w, b, gamma, beta) in params:
        lhs, rhs = y, w
        if quantize_matmul:
            lhs = lhs.astype(jnp.bfloat16).astype(jnp.float32)
            rhs = rhs.astype(jnp.bfloat16).astype(jnp.float32)
        y = jax.lax.conv_general_dilated(
            lhs, rhs, window_strides=(1,), padding=[(padding, padding)],
            dimension_numbers=("NCH", "OIH", "NCH"),
            precision=jax.lax.Precision.HIGHEST)
        y = y + b[None, :, None]
        mean = jnp.mean(y, axis=(0, 2), keepdims=True)
        var = jnp.mean((y - mean) ** 2, axis=(0, 2), keepdims=True)
        y = (y - mean) * jax.lax.rsqrt(var + EPS)
        y = y * gamma[None, :, None] + beta[None, :, None]
        y = jnp.maximum(y, 0.0)
    return y


if __name__ == "__main__":
    # Small, module-consistent shapes.
    N, C_IN, L = 2, 4, 16
    HIDDEN, C_OUT = 32, 32
    NUM_HIDDEN_LAYERS = 2
    KERNEL_SIZE, PADDING = 11, 5

    key = jax.random.PRNGKey(0)
    key, kx = jax.random.split(key)
    x = jax.random.normal(kx, (N, C_IN, L), jnp.float32)   # NCL like torch

    params = init_encoder_params(
        key, C_IN, HIDDEN, C_OUT, NUM_HIDDEN_LAYERS, KERNEL_SIZE)

    # tile_l=8 forces multiple L-tiles per example even at demo length so the
    # cross-tile statistic accumulation path is exercised (production default
    # is 256-row tiles).
    fwd = jax.jit(lambda xx: encoder_forward(xx, params, PADDING, tile_l=8))
    out = jax.block_until_ready(fwd(x))
    assert out.shape == (N, C_OUT, L), out.shape

    # Tight check vs a reference doing the same bf16-operand / f32-accum math.
    ref_q = _reference_forward(x, params, PADDING, quantize_matmul=True)
    err_q = float(jnp.max(jnp.abs(out - ref_q)))
    assert jnp.allclose(out, ref_q, atol=1e-2, rtol=1e-2), err_q

    # Loose check vs the pure-f32 PyTorch-semantics reference (tolerance
    # loosened because matmul operands are bf16 in the kernel).
    ref_f = _reference_forward(x, params, PADDING, quantize_matmul=False)
    err_f = float(jnp.max(jnp.abs(out - ref_f)))
    assert jnp.allclose(out, ref_f, atol=1e-1, rtol=1e-1), err_f

    # Ragged length (13 not a multiple of the 8-row L-tile) exercises the
    # masked-row statistics path.
    key, kx2 = jax.random.split(key)
    x2 = jax.random.normal(kx2, (N, C_IN, 13), jnp.float32)
    out2 = jax.block_until_ready(
        jax.jit(lambda xx: encoder_forward(xx, params, PADDING, tile_l=8))(x2))
    assert out2.shape == (N, C_OUT, 13), out2.shape
    ref2 = _reference_forward(x2, params, PADDING, quantize_matmul=True)
    err2 = float(jnp.max(jnp.abs(out2 - ref2)))
    assert jnp.allclose(out2, ref2, atol=1e-2, rtol=1e-2), err2

    print("KERNEL_OK")
</pallas_src>

<mosaic_0001>
module attributes {stable_mosaic.version = 11 : i64} {
  func.func @_conv_bn_relu_kernel(%arg0: i32, %arg1: i32, %arg2: memref<1x26x4xf32, #tpu.memory_space<vmem>>, %arg3: memref<11x4x128xbf16, #tpu.memory_space<vmem>>, %arg4: memref<1x128xf32, #tpu.memory_space<vmem>>, %arg5: memref<2x128xf32, #tpu.memory_space<vmem>>, %arg6: memref<1x128xf32, #tpu.memory_space<vmem>>, %arg7: memref<1x128xf32, #tpu.memory_space<vmem>>, %arg8: memref<1x8x128xf32, #tpu.memory_space<vmem>>) attributes {dimension_semantics = [#tpu.dimension_semantics<parallel>, #tpu.dimension_semantics<parallel>], iteration_bounds = array<i64: 2, 2>, scalar_prefetch = 0 : i64, scratch_operands = 0 : i64, tpu.core_type = #tpu.core_type<tc>, window_params = [{transform_indices = @transform_0, window_bounds = array<i64: 1, 26, 4>}, {pipeline_mode = #tpu.pipeline_mode<synchronous>, transform_indices = @transform_1, window_bounds = array<i64: 11, 4, 128>}, {pipeline_mode = #tpu.pipeline_mode<synchronous>, transform_indices = @transform_2, window_bounds = array<i64: 1, 128>}, {pipeline_mode = #tpu.pipeline_mode<synchronous>, transform_indices = @transform_3, window_bounds = array<i64: 2, 128>}, {pipeline_mode = #tpu.pipeline_mode<synchronous>, transform_indices = @transform_4, window_bounds = array<i64: 1, 128>}, {pipeline_mode = #tpu.pipeline_mode<synchronous>, transform_indices = @transform_5, window_bounds = array<i64: 1, 128>}, {transform_indices = @transform_6, window_bounds = array<i64: 1, 8, 128>}]} {
    %c8_i32 = arith.constant 8 : i32
    %0 = arith.muli %arg1, %c8_i32 : i32
    %1 = tpu.assume_multiple %0, 8 : i32
    %cst = arith.constant 0.000000e+00 : f32
    %2 = vector.broadcast %cst : f32 to vector<8x128xf32>
    %c0_i32 = arith.constant 0 : i32
    %3 = arith.addi %1, %c0_i32 : i32
    %c0 = arith.constant 0 : index
    %4 = arith.index_cast %3 : i32 to index
    %c0_0 = arith.constant 0 : index
    %5 = vector.load %arg2[%c0, %4, %c0_0] : memref<1x26x4xf32, #tpu.memory_space<vmem>>, vector<1x8x4xf32>
    %6 = vector.shape_cast %5 : vector<1x8x4xf32> to vector<8x4xf32>
    %7 = arith.truncf %6 : vector<8x4xf32> to vector<8x4xbf16>
    %c0_1 = arith.constant 0 : index
    %c0_2 = arith.constant 0 : index
    %c0_3 = arith.constant 0 : index
    %8 = vector.load %arg3[%c0_1, %c0_2, %c0_3] : memref<11x4x128xbf16, #tpu.memory_space<vmem>>, vector<1x4x128xbf16>
    %9 = vector.shape_cast %8 : vector<1x4x128xbf16> to vector<4x128xbf16>
    %cst_4 = arith.constant dense<0.000000e+00> : vector<8x128xf32>
    %10 = tpu.matmul %7, %9, %cst_4 {dimension_numbers = #tpu.dot_dimension_numbers<[1], [0], [0], [1], [0, 0, 1, 1], [], []>} : vector<8x4xbf16>, vector<4x128xbf16>, vector<8x128xf32> -> vector<8x128xf32>
    %11 = arith.addf %2, %10 : vector<8x128xf32>
    %c1_i32 = arith.constant 1 : i32
    %12 = arith.addi %1, %c1_i32 : i32
    %c0_5 = arith.constant 0 : index
    %13 = arith.index_cast %12 : i32 to index
    %c0_6 = arith.constant 0 : index
    %14 = vector.load %arg2[%c0_5, %13, %c0_6] : memref<1x26x4xf32, #tpu.memory_space<vmem>>, vector<1x8x4xf32>
    %15 = vector.shape_cast %14 : vector<1x8x4xf32> to vector<8x4xf32>
    %16 = arith.truncf %15 : vector<8x4xf32> to vector<8x4xbf16>
    %c1 = arith.constant 1 : index
    %c0_7 = arith.constant 0 : index
    %c0_8 = arith.constant 0 : index
    %17 = vector.load %arg3[%c1, %c0_7, %c0_8] : memref<11x4x128xbf16, #tpu.memory_space<vmem>>, vector<1x4x128xbf16>
    %18 = vector.shape_cast %17 : vector<1x4x128xbf16> to vector<4x128xbf16>
    %cst_9 = arith.constant dense<0.000000e+00> : vector<8x128xf32>
    %19 = tpu.matmul %16, %18, %cst_9 {dimension_numbers = #tpu.dot_dimension_numbers<[1], [0], [0], [1], [0, 0, 1, 1], [], []>} : vector<8x4xbf16>, vector<4x128xbf16>, vector<8x128xf32> -> vector<8x128xf32>
    %20 = arith.addf %11, %19 : vector<8x128xf32>
    %c2_i32 = arith.constant 2 : i32
    %21 = arith.addi %1, %c2_i32 : i32
    %c0_10 = arith.constant 0 : index
    %22 = arith.index_cast %21 : i32 to index
    %c0_11 = arith.constant 0 : index
    %23 = vector.load %arg2[%c0_10, %22, %c0_11] : memref<1x26x4xf32, #tpu.memory_space<vmem>>, vector<1x8x4xf32>
    %24 = vector.shape_cast %23 : vector<1x8x4xf32> to vector<8x4xf32>
    %25 = arith.truncf %24 : vector<8x4xf32> to vector<8x4xbf16>
    %c2 = arith.constant 2 : index
    %c0_12 = arith.constant 0 : index
    %c0_13 = arith.constant 0 : index
    %26 = vector.load %arg3[%c2, %c0_12, %c0_13] : memref<11x4x128xbf16, #tpu.memory_space<vmem>>, vector<1x4x128xbf16>
    %27 = vector.shape_cast %26 : vector<1x4x128xbf16> to vector<4x128xbf16>
    %cst_14 = arith.constant dense<0.000000e+00> : vector<8x128xf32>
    %28 = tpu.matmul %25, %27, %cst_14 {dimension_numbers = #tpu.dot_dimension_numbers<[1], [0], [0], [1], [0, 0, 1, 1], [], []>} : vector<8x4xbf16>, vector<4x128xbf16>, vector<8x128xf32> -> vector<8x128xf32>
    %29 = arith.addf %20, %28 : vector<8x128xf32>
    %c3_i32 = arith.constant 3 : i32
    %30 = arith.addi %1, %c3_i32 : i32
    %c0_15 = arith.constant 0 : index
    %31 = arith.index_cast %30 : i32 to index
    %c0_16 = arith.constant 0 : index
    %32 = vector.load %arg2[%c0_15, %31, %c0_16] : memref<1x26x4xf32, #tpu.memory_space<vmem>>, vector<1x8x4xf32>
    %33 = vector.shape_cast %32 : vector<1x8x4xf32> to vector<8x4xf32>
    %34 = arith.truncf %33 : vector<8x4xf32> to vector<8x4xbf16>
    %c3 = arith.constant 3 : index
    %c0_17 = arith.constant 0 : index
    %c0_18 = arith.constant 0 : index
    %35 = vector.load %arg3[%c3, %c0_17, %c0_18] : memref<11x4x128xbf16, #tpu.memory_space<vmem>>, vector<1x4x128xbf16>
    %36 = vector.shape_cast %35 : vector<1x4x128xbf16> to vector<4x128xbf16>
    %cst_19 = arith.constant dense<0.000000e+00> : vector<8x128xf32>
    %37 = tpu.matmul %34, %36, %cst_19 {dimension_numbers = #tpu.dot_dimension_numbers<[1], [0], [0], [1], [0, 0, 1, 1], [], []>} : vector<8x4xbf16>, vector<4x128xbf16>, vector<8x128xf32> -> vector<8x128xf32>
    %38 = arith.addf %29, %37 : vector<8x128xf32>
    %c4_i32 = arith.constant 4 : i32
    %39 = arith.addi %1, %c4_i32 : i32
    %c0_20 = arith.constant 0 : index
    %40 = arith.index_cast %39 : i32 to index
    %c0_21 = arith.constant 0 : index
    %41 = vector.load %arg2[%c0_20, %40, %c0_21] : memref<1x26x4xf32, #tpu.memory_space<vmem>>, vector<1x8x4xf32>
    %42 = vector.shape_cast %41 : vector<1x8x4xf32> to vector<8x4xf32>
    %43 = arith.truncf %42 : vector<8x4xf32> to vector<8x4xbf16>
    %c4 = arith.constant 4 : index
    %c0_22 = arith.constant 0 : index
    %c0_23 = arith.constant 0 : index
    %44 = vector.load %arg3[%c4, %c0_22, %c0_23] : memref<11x4x128xbf16, #tpu.memory_space<vmem>>, vector<1x4x128xbf16>
    %45 = vector.shape_cast %44 : vector<1x4x128xbf16> to vector<4x128xbf16>
    %cst_24 = arith.constant dense<0.000000e+00> : vector<8x128xf32>
    %46 = tpu.matmul %43, %45, %cst_24 {dimension_numbers = #tpu.dot_dimension_numbers<[1], [0], [0], [1], [0, 0, 1, 1], [], []>} : vector<8x4xbf16>, vector<4x128xbf16>, vector<8x128xf32> -> vector<8x128xf32>
    %47 = arith.addf %38, %46 : vector<8x128xf32>
    %c5_i32 = arith.constant 5 : i32
    %48 = arith.addi %1, %c5_i32 : i32
    %c0_25 = arith.constant 0 : index
    %49 = arith.index_cast %48 : i32 to index
    %c0_26 = arith.constant 0 : index
    %50 = vector.load %arg2[%c0_25, %49, %c0_26] : memref<1x26x4xf32, #tpu.memory_space<vmem>>, vector<1x8x4xf32>
    %51 = vector.shape_cast %50 : vector<1x8x4xf32> to vector<8x4xf32>
    %52 = arith.truncf %51 : vector<8x4xf32> to vector<8x4xbf16>
    %c5 = arith.constant 5 : index
    %c0_27 = arith.constant 0 : index
    %c0_28 = arith.constant 0 : index
    %53 = vector.load %arg3[%c5, %c0_27, %c0_28] : memref<11x4x128xbf16, #tpu.memory_space<vmem>>, vector<1x4x128xbf16>
    %54 = vector.shape_cast %53 : vector<1x4x128xbf16> to vector<4x128xbf16>
    %cst_29 = arith.constant dense<0.000000e+00> : vector<8x128xf32>
    %55 = tpu.matmul %52, %54, %cst_29 {dimension_numbers = #tpu.dot_dimension_numbers<[1], [0], [0], [1], [0, 0, 1, 1], [], []>} : vector<8x4xbf16>, vector<4x128xbf16>, vector<8x128xf32> -> vector<8x128xf32>
    %56 = arith.addf %47, %55 : vector<8x128xf32>
    %c6_i32 = arith.constant 6 : i32
    %57 = arith.addi %1, %c6_i32 : i32
    %c0_30 = arith.constant 0 : index
    %58 = arith.index_cast %57 : i32 to index
    %c0_31 = arith.constant 0 : index
    %59 = vector.load %arg2[%c0_30, %58, %c0_31] : memref<1x26x4xf32, #tpu.memory_space<vmem>>, vector<1x8x4xf32>
    %60 = vector.shape_cast %59 : vector<1x8x4xf32> to vector<8x4xf32>
    %61 = arith.truncf %60 : vector<8x4xf32> to vector<8x4xbf16>
    %c6 = arith.constant 6 : index
    %c0_32 = arith.constant 0 : index
    %c0_33 = arith.constant 0 : index
    %62 = vector.load %arg3[%c6, %c0_32, %c0_33] : memref<11x4x128xbf16, #tpu.memory_space<vmem>>, vector<1x4x128xbf16>
    %63 = vector.shape_cast %62 : vector<1x4x128xbf16> to vector<4x128xbf16>
    %cst_34 = arith.constant dense<0.000000e+00> : vector<8x128xf32>
    %64 = tpu.matmul %61, %63, %cst_34 {dimension_numbers = #tpu.dot_dimension_numbers<[1], [0], [0], [1], [0, 0, 1, 1], [], []>} : vector<8x4xbf16>, vector<4x128xbf16>, vector<8x128xf32> -> vector<8x128xf32>
    %65 = arith.addf %56, %64 : vector<8x128xf32>
    %c7_i32 = arith.constant 7 : i32
    %66 = arith.addi %1, %c7_i32 : i32
    %c0_35 = arith.constant 0 : index
    %67 = arith.index_cast %66 : i32 to index
    %c0_36 = arith.constant 0 : index
    %68 = vector.load %arg2[%c0_35, %67, %c0_36] : memref<1x26x4xf32, #tpu.memory_space<vmem>>, vector<1x8x4xf32>
    %69 = vector.shape_cast %68 : vector<1x8x4xf32> to vector<8x4xf32>
    %70 = arith.truncf %69 : vector<8x4xf32> to vector<8x4xbf16>
    %c7 = arith.constant 7 : index
    %c0_37 = arith.constant 0 : index
    %c0_38 = arith.constant 0 : index
    %71 = vector.load %arg3[%c7, %c0_37, %c0_38] : memref<11x4x128xbf16, #tpu.memory_space<vmem>>, vector<1x4x128xbf16>
    %72 = vector.shape_cast %71 : vector<1x4x128xbf16> to vector<4x128xbf16>
    %cst_39 = arith.constant dense<0.000000e+00> : vector<8x128xf32>
    %73 = tpu.matmul %70, %72, %cst_39 {dimension_numbers = #tpu.dot_dimension_numbers<[1], [0], [0], [1], [0, 0, 1, 1], [], []>} : vector<8x4xbf16>, vector<4x128xbf16>, vector<8x128xf32> -> vector<8x128xf32>
    %74 = arith.addf %65, %73 : vector<8x128xf32>
    %c8_i32_40 = arith.constant 8 : i32
    %75 = arith.addi %1, %c8_i32_40 : i32
    %c0_41 = arith.constant 0 : index
    %76 = arith.index_cast %75 : i32 to index
    %c0_42 = arith.constant 0 : index
    %77 = vector.load %arg2[%c0_41, %76, %c0_42] : memref<1x26x4xf32, #tpu.memory_space<vmem>>, vector<1x8x4xf32>
    %78 = vector.shape_cast %77 : vector<1x8x4xf32> to vector<8x4xf32>
    %79 = arith.truncf %78 : vector<8x4xf32> to vector<8x4xbf16>
    %c8 = arith.constant 8 : index
    %c0_43 = arith.constant 0 : index
    %c0_44 = arith.constant 0 : index
    %80 = vector.load %arg3[%c8, %c0_43, %c0_44] : memref<11x4x128xbf16, #tpu.memory_space<vmem>>, vector<1x4x128xbf16>
    %81 = vector.shape_cast %80 : vector<1x4x128xbf16> to vector<4x128xbf16>
    %cst_45 = arith.constant dense<0.000000e+00> : vector<8x128xf32>
    %82 = tpu.matmul %79, %81, %cst_45 {dimension_numbers = #tpu.dot_dimension_numbers<[1], [0], [0], [1], [0, 0, 1, 1], [], []>} : vector<8x4xbf16>, vector<4x128xbf16>, vector<8x128xf32> -> vector<8x128xf32>
    %83 = arith.addf %74, %82 : vector<8x128xf32>
    %c9_i32 = arith.constant 9 : i32
    %84 = arith.addi %1, %c9_i32 : i32
    %c0_46 = arith.constant 0 : index
    %85 = arith.index_cast %84 : i32 to index
    %c0_47 = arith.constant 0 : index
    %86 = vector.load %arg2[%c0_46, %85, %c0_47] : memref<1x26x4xf32, #tpu.memory_space<vmem>>, vector<1x8x4xf32>
    %87 = vector.shape_cast %86 : vector<1x8x4xf32> to vector<8x4xf32>
    %88 = arith.truncf %87 : vector<8x4xf32> to vector<8x4xbf16>
    %c9 = arith.constant 9 : index
    %c0_48 = arith.constant 0 : index
    %c0_49 = arith.constant 0 : index
    %89 = vector.load %arg3[%c9, %c0_48, %c0_49] : memref<11x4x128xbf16, #tpu.memory_space<vmem>>, vector<1x4x128xbf16>
    %90 = vector.shape_cast %89 : vector<1x4x128xbf16> to vector<4x128xbf16>
    %cst_50 = arith.constant dense<0.000000e+00> : vector<8x128xf32>
    %91 = tpu.matmul %88, %90, %cst_50 {dimension_numbers = #tpu.dot_dimension_numbers<[1], [0], [0], [1], [0, 0, 1, 1], [], []>} : vector<8x4xbf16>, vector<4x128xbf16>, vector<8x128xf32> -> vector<8x128xf32>
    %92 = arith.addf %83, %91 : vector<8x128xf32>
    %c10_i32 = arith.constant 10 : i32
    %93 = arith.addi %1, %c10_i32 : i32
    %c0_51 = arith.constant 0 : index
    %94 = arith.index_cast %93 : i32 to index
    %c0_52 = arith.constant 0 : index
    %95 = vector.load %arg2[%c0_51, %94, %c0_52] : memref<1x26x4xf32, #tpu.memory_space<vmem>>, vector<1x8x4xf32>
    %96 = vector.shape_cast %95 : vector<1x8x4xf32> to vector<8x4xf32>
    %97 = arith.truncf %96 : vector<8x4xf32> to vector<8x4xbf16>
    %c10 = arith.constant 10 : index
    %c0_53 = arith.constant 0 : index
    %c0_54 = arith.constant 0 : index
    %98 = vector.load %arg3[%c10, %c0_53, %c0_54] : memref<11x4x128xbf16, #tpu.memory_space<vmem>>, vector<1x4x128xbf16>
    %99 = vector.shape_cast %98 : vector<1x4x128xbf16> to vector<4x128xbf16>
    %cst_55 = arith.constant dense<0.000000e+00> : vector<8x128xf32>
    %100 = tpu.matmul %97, %99, %cst_55 {dimension_numbers = #tpu.dot_dimension_numbers<[1], [0], [0], [1], [0, 0, 1, 1], [], []>} : vector<8x4xbf16>, vector<4x128xbf16>, vector<8x128xf32> -> vector<8x128xf32>
    %101 = arith.addf %92, %100 : vector<8x128xf32>
    %c0_56 = arith.constant 0 : index
    %c0_57 = arith.constant 0 : index
    %102 = vector.load %arg4[%c0_56, %c0_57] : memref<1x128xf32, #tpu.memory_space<vmem>>, vector<1x128xf32>
    %103 = vector.broadcast %102 : vector<1x128xf32> to vector<8x128xf32>
    %104 = arith.addf %101, %103 : vector<8x128xf32>
    %c0_58 = arith.constant 0 : index
    %c0_59 = arith.constant 0 : index
    %105 = vector.load %arg5[%c0_58, %c0_59] : memref<2x128xf32, #tpu.memory_space<vmem>>, vector<1x128xf32>
    %cst_60 = arith.constant 3.125000e-02 : f32
    %106 = vector.broadcast %cst_60 : f32 to vector<1x128xf32>
    %107 = arith.mulf %105, %106 : vector<1x128xf32>
    %c1_61 = arith.constant 1 : index
    %c0_62 = arith.constant 0 : index
    %108 = vector.load %arg5[%c1_61, %c0_62] : memref<2x128xf32, #tpu.memory_space<vmem>>, vector<1x128xf32>
    %cst_63 = arith.constant 3.125000e-02 : f32
    %109 = vector.broadcast %cst_63 : f32 to vector<1x128xf32>
    %110 = arith.mulf %108, %109 : vector<1x128xf32>
    %111 = arith.mulf %107, %107 : vector<1x128xf32>
    %112 = arith.subf %110, %111 : vector<1x128xf32>
    %cst_64 = arith.constant 0.000000e+00 : f32
    %113 = vector.broadcast %cst_64 : f32 to vector<1x128xf32>
    %114 = arith.maximumf %112, %113 : vector<1x128xf32>
    %c0_65 = arith.constant 0 : index
    %c0_66 = arith.constant 0 : index
    %115 = vector.load %arg6[%c0_65, %c0_66] : memref<1x128xf32, #tpu.memory_space<vmem>>, vector<1x128xf32>
    %cst_67 = arith.constant 9.99999974E-6 : f32
    %116 = vector.broadcast %cst_67 : f32 to vector<1x128xf32>
    %117 = arith.addf %114, %116 : vector<1x128xf32>
    %118 = math.rsqrt %117 : vector<1x128xf32>
    %119 = arith.mulf %115, %118 : vector<1x128xf32>
    %c0_68 = arith.constant 0 : index
    %c0_69 = arith.constant 0 : index
    %120 = vector.load %arg7[%c0_68, %c0_69] : memref<1x128xf32, #tpu.memory_space<vmem>>, vector<1x128xf32>
    %121 = arith.mulf %107, %119 : vector<1x128xf32>
    %122 = arith.subf %120, %121 : vector<1x128xf32>
    %123 = vector.broadcast %119 : vector<1x128xf32> to vector<8x128xf32>
    %124 = arith.mulf %104, %123 : vector<8x128xf32>
    %125 = vector.broadcast %122 : vector<1x128xf32> to vector<8x128xf32>
    %126 = arith.addf %124, %125 : vector<8x128xf32>
    %cst_70 = arith.constant 0.000000e+00 : f32
    %127 = vector.broadcast %cst_70 : f32 to vector<8x128xf32>
    %128 = arith.maximumf %126, %127 : vector<8x128xf32>
    %c0_71 = arith.constant 0 : index
    %c0_72 = arith.constant 0 : index
    %c0_73 = arith.constant 0 : index
    %129 = vector.load %arg8[%c0_71, %c0_72, %c0_73] : memref<1x8x128xf32, #tpu.memory_space<vmem>>, vector<1x8x128xf32>
    %130 = vector.shape_cast %129 : vector<1x8x128xf32> to vector<8x128xf32>
    %131 = vector.shape_cast %128 : vector<8x128xf32> to vector<1x8x128xf32>
    tpu.vector_store %arg8[%c0_71, %c0_72, %c0_73], %131 {strides = array<i32>} : memref<1x8x128xf32, #tpu.memory_space<vmem>>, vector<1x8x128xf32>,
    return
  }
  func.func @transform_0(%arg0: i32, %arg1: i32) -> (i32, i32, i32) {
    %c0_i32 = arith.constant 0 : i32
    %c0_i32_0 = arith.constant 0 : i32
    %c0_i32_1 = arith.constant 0 : i32
    return %arg0, %c0_i32, %c0_i32_0 : i32, i32, i32
  }
  func.func @transform_1(%arg0: i32, %arg1: i32) -> (i32, i32, i32) {
    %c0_i32 = arith.constant 0 : i32
    %c0_i32_0 = arith.constant 0 : i32
    %c0_i32_1 = arith.constant 0 : i32
    %c0_i32_2 = arith.constant 0 : i32
    return %c0_i32, %c0_i32_0, %c0_i32_1 : i32, i32, i32
  }
  func.func @transform_2(%arg0: i32, %arg1: i32) -> (i32, i32) {
    %c0_i32 = arith.constant 0 : i32
    %c0_i32_0 = arith.constant 0 : i32
    %c0_i32_1 = arith.constant 0 : i32
    return %c0_i32, %c0_i32_0 : i32, i32
  }
  func.func @transform_3(%arg0: i32, %arg1: i32) -> (i32, i32) {
    %c0_i32 = arith.constant 0 : i32
    %c0_i32_0 = arith.constant 0 : i32
    %c0_i32_1 = arith.constant 0 : i32
    return %c0_i32, %c0_i32_0 : i32, i32
  }
  func.func @transform_4(%arg0: i32, %arg1: i32) -> (i32, i32) {
    %c0_i32 = arith.constant 0 : i32
    %c0_i32_0 = arith.constant 0 : i32
    %c0_i32_1 = arith.constant 0 : i32
    return %c0_i32, %c0_i32_0 : i32, i32
  }
  func.func @transform_5(%arg0: i32, %arg1: i32) -> (i32, i32) {
    %c0_i32 = arith.constant 0 : i32
    %c0_i32_0 = arith.constant 0 : i32
    %c0_i32_1 = arith.constant 0 : i32
    return %c0_i32, %c0_i32_0 : i32, i32
  }
  func.func @transform_6(%arg0: i32, %arg1: i32) -> (i32, i32, i32) {
    %c0_i32 = arith.constant 0 : i32
    %c0_i32_0 = arith.constant 0 : i32
    return %arg0, %arg1, %c0_i32 : i32, i32, i32
  }
}

module attributes {stable_mosaic.version = 11 : i64} {
  func.func @_conv_stats_kernel(%arg0: i32, %arg1: i32, %arg2: memref<1x26x4xf32, #tpu.memory_space<vmem>>, %arg3: memref<11x4x128xbf16, #tpu.memory_space<vmem>>, %arg4: memref<1x128xf32, #tpu.memory_space<vmem>>, %arg5: memref<2x128xf32, #tpu.memory_space<vmem>>) attributes {dimension_semantics = [#tpu.dimension_semantics<arbitrary>, #tpu.dimension_semantics<arbitrary>], iteration_bounds = array<i64: 2, 2>, scalar_prefetch = 0 : i64, scratch_operands = 0 : i64, tpu.core_type = #tpu.core_type<tc>, window_params = [{transform_indices = @transform_0, window_bounds = array<i64: 1, 26, 4>}, {pipeline_mode = #tpu.pipeline_mode<synchronous>, transform_indices = @transform_1, window_bounds = array<i64: 11, 4, 128>}, {pipeline_mode = #tpu.pipeline_mode<synchronous>, transform_indices = @transform_2, window_bounds = array<i64: 1, 128>}, {pipeline_mode = #tpu.pipeline_mode<synchronous>, transform_indices = @transform_3, window_bounds = array<i64: 2, 128>}]} {
    %c0_i32 = arith.constant 0 : i32
    %0 = arith.cmpi eq, %arg0, %c0_i32 : i32
    %c0_i32_0 = arith.constant 0 : i32
    %1 = arith.cmpi eq, %arg1, %c0_i32_0 : i32
    %2 = arith.andi %0, %1 : i1
    %3 = arith.extui %2 : i1 to i32
    %c0_i32_1 = arith.constant 0 : i32
    %4 = arith.cmpi ne, %3, %c0_i32_1 : i32
    scf.if %4 {
      %cst_72 = arith.constant 0.000000e+00 : f32
      %128 = vector.broadcast %cst_72 : f32 to vector<2x128xf32>
      %c0_73 = arith.constant 0 : index
      %c0_74 = arith.constant 0 : index
      %129 = vector.load %arg5[%c0_73, %c0_74] : memref<2x128xf32, #tpu.memory_space<vmem>>, vector<2x128xf32>
      tpu.vector_store %arg5[%c0_73, %c0_74], %128 {strides = array<i32>} : memref<2x128xf32, #tpu.memory_space<vmem>>, vector<2x128xf32>,
    } else {
    }
    %c8_i32 = arith.constant 8 : i32
    %5 = arith.muli %arg1, %c8_i32 : i32
    %6 = tpu.assume_multiple %5, 8 : i32
    %cst = arith.constant 0.000000e+00 : f32
    %7 = vector.broadcast %cst : f32 to vector<8x128xf32>
    %c0_i32_2 = arith.constant 0 : i32
    %8 = arith.addi %6, %c0_i32_2 : i32
    %c0 = arith.constant 0 : index
    %9 = arith.index_cast %8 : i32 to index
    %c0_3 = arith.constant 0 : index
    %10 = vector.load %arg2[%c0, %9, %c0_3] : memref<1x26x4xf32, #tpu.memory_space<vmem>>, vector<1x8x4xf32>
    %11 = vector.shape_cast %10 : vector<1x8x4xf32> to vector<8x4xf32>
    %12 = arith.truncf %11 : vector<8x4xf32> to vector<8x4xbf16>
    %c0_4 = arith.constant 0 : index
    %c0_5 = arith.constant 0 : index
    %c0_6 = arith.constant 0 : index
    %13 = vector.load %arg3[%c0_4, %c0_5, %c0_6] : memref<11x4x128xbf16, #tpu.memory_space<vmem>>, vector<1x4x128xbf16>
    %14 = vector.shape_cast %13 : vector<1x4x128xbf16> to vector<4x128xbf16>
    %cst_7 = arith.constant dense<0.000000e+00> : vector<8x128xf32>
    %15 = tpu.matmul %12, %14, %cst_7 {dimension_numbers = #tpu.dot_dimension_numbers<[1], [0], [0], [1], [0, 0, 1, 1], [], []>} : vector<8x4xbf16>, vector<4x128xbf16>, vector<8x128xf32> -> vector<8x128xf32>
    %16 = arith.addf %7, %15 : vector<8x128xf32>
    %c1_i32 = arith.constant 1 : i32
    %17 = arith.addi %6, %c1_i32 : i32
    %c0_8 = arith.constant 0 : index
    %18 = arith.index_cast %17 : i32 to index
    %c0_9 = arith.constant 0 : index
    %19 = vector.load %arg2[%c0_8, %18, %c0_9] : memref<1x26x4xf32, #tpu.memory_space<vmem>>, vector<1x8x4xf32>
    %20 = vector.shape_cast %19 : vector<1x8x4xf32> to vector<8x4xf32>
    %21 = arith.truncf %20 : vector<8x4xf32> to vector<8x4xbf16>
    %c1 = arith.constant 1 : index
    %c0_10 = arith.constant 0 : index
    %c0_11 = arith.constant 0 : index
    %22 = vector.load %arg3[%c1, %c0_10, %c0_11] : memref<11x4x128xbf16, #tpu.memory_space<vmem>>, vector<1x4x128xbf16>
    %23 = vector.shape_cast %22 : vector<1x4x128xbf16> to vector<4x128xbf16>
    %cst_12 = arith.constant dense<0.000000e+00> : vector<8x128xf32>
    %24 = tpu.matmul %21, %23, %cst_12 {dimension_numbers = #tpu.dot_dimension_numbers<[1], [0], [0], [1], [0, 0, 1, 1], [], []>} : vector<8x4xbf16>, vector<4x128xbf16>, vector<8x128xf32> -> vector<8x128xf32>
    %25 = arith.addf %16, %24 : vector<8x128xf32>
    %c2_i32 = arith.constant 2 : i32
    %26 = arith.addi %6, %c2_i32 : i32
    %c0_13 = arith.constant 0 : index
    %27 = arith.index_cast %26 : i32 to index
    %c0_14 = arith.constant 0 : index
    %28 = vector.load %arg2[%c0_13, %27, %c0_14] : memref<1x26x4xf32, #tpu.memory_space<vmem>>, vector<1x8x4xf32>
    %29 = vector.shape_cast %28 : vector<1x8x4xf32> to vector<8x4xf32>
    %30 = arith.truncf %29 : vector<8x4xf32> to vector<8x4xbf16>
    %c2 = arith.constant 2 : index
    %c0_15 = arith.constant 0 : index
    %c0_16 = arith.constant 0 : index
    %31 = vector.load %arg3[%c2, %c0_15, %c0_16] : memref<11x4x128xbf16, #tpu.memory_space<vmem>>, vector<1x4x128xbf16>
    %32 = vector.shape_cast %31 : vector<1x4x128xbf16> to vector<4x128xbf16>
    %cst_17 = arith.constant dense<0.000000e+00> : vector<8x128xf32>
    %33 = tpu.matmul %30, %32, %cst_17 {dimension_numbers = #tpu.dot_dimension_numbers<[1], [0], [0], [1], [0, 0, 1, 1], [], []>} : vector<8x4xbf16>, vector<4x128xbf16>, vector<8x128xf32> -> vector<8x128xf32>
    %34 = arith.addf %25, %33 : vector<8x128xf32>
    %c3_i32 = arith.constant 3 : i32
    %35 = arith.addi %6, %c3_i32 : i32
    %c0_18 = arith.constant 0 : index
    %36 = arith.index_cast %35 : i32 to index
    %c0_19 = arith.constant 0 : index
    %37 = vector.load %arg2[%c0_18, %36, %c0_19] : memref<1x26x4xf32, #tpu.memory_space<vmem>>, vector<1x8x4xf32>
    %38 = vector.shape_cast %37 : vector<1x8x4xf32> to vector<8x4xf32>
    %39 = arith.truncf %38 : vector<8x4xf32> to vector<8x4xbf16>
    %c3 = arith.constant 3 : index
    %c0_20 = arith.constant 0 : index
    %c0_21 = arith.constant 0 : index
    %40 = vector.load %arg3[%c3, %c0_20, %c0_21] : memref<11x4x128xbf16, #tpu.memory_space<vmem>>, vector<1x4x128xbf16>
    %41 = vector.shape_cast %40 : vector<1x4x128xbf16> to vector<4x128xbf16>
    %cst_22 = arith.constant dense<0.000000e+00> : vector<8x128xf32>
    %42 = tpu.matmul %39, %41, %cst_22 {dimension_numbers = #tpu.dot_dimension_numbers<[1], [0], [0], [1], [0, 0, 1, 1], [], []>} : vector<8x4xbf16>, vector<4x128xbf16>, vector<8x128xf32> -> vector<8x128xf32>
    %43 = arith.addf %34, %42 : vector<8x128xf32>
    %c4_i32 = arith.constant 4 : i32
    %44 = arith.addi %6, %c4_i32 : i32
    %c0_23 = arith.constant 0 : index
    %45 = arith.index_cast %44 : i32 to index
    %c0_24 = arith.constant 0 : index
    %46 = vector.load %arg2[%c0_23, %45, %c0_24] : memref<1x26x4xf32, #tpu.memory_space<vmem>>, vector<1x8x4xf32>
    %47 = vector.shape_cast %46 : vector<1x8x4xf32> to vector<8x4xf32>
    %48 = arith.truncf %47 : vector<8x4xf32> to vector<8x4xbf16>
    %c4 = arith.constant 4 : index
    %c0_25 = arith.constant 0 : index
    %c0_26 = arith.constant 0 : index
    %49 = vector.load %arg3[%c4, %c0_25, %c0_26] : memref<11x4x128xbf16, #tpu.memory_space<vmem>>, vector<1x4x128xbf16>
    %50 = vector.shape_cast %49 : vector<1x4x128xbf16> to vector<4x128xbf16>
    %cst_27 = arith.constant dense<0.000000e+00> : vector<8x128xf32>
    %51 = tpu.matmul %48, %50, %cst_27 {dimension_numbers = #tpu.dot_dimension_numbers<[1], [0], [0], [1], [0, 0, 1, 1], [], []>} : vector<8x4xbf16>, vector<4x128xbf16>, vector<8x128xf32> -> vector<8x128xf32>
    %52 = arith.addf %43, %51 : vector<8x128xf32>
    %c5_i32 = arith.constant 5 : i32
    %53 = arith.addi %6, %c5_i32 : i32
    %c0_28 = arith.constant 0 : index
    %54 = arith.index_cast %53 : i32 to index
    %c0_29 = arith.constant 0 : index
    %55 = vector.load %arg2[%c0_28, %54, %c0_29] : memref<1x26x4xf32, #tpu.memory_space<vmem>>, vector<1x8x4xf32>
    %56 = vector.shape_cast %55 : vector<1x8x4xf32> to vector<8x4xf32>
    %57 = arith.truncf %56 : vector<8x4xf32> to vector<8x4xbf16>
    %c5 = arith.constant 5 : index
    %c0_30 = arith.constant 0 : index
    %c0_31 = arith.constant 0 : index
    %58 = vector.load %arg3[%c5, %c0_30, %c0_31] : memref<11x4x128xbf16, #tpu.memory_space<vmem>>, vector<1x4x128xbf16>
    %59 = vector.shape_cast %58 : vector<1x4x128xbf16> to vector<4x128xbf16>
    %cst_32 = arith.constant dense<0.000000e+00> : vector<8x128xf32>
    %60 = tpu.matmul %57, %59, %cst_32 {dimension_numbers = #tpu.dot_dimension_numbers<[1], [0], [0], [1], [0, 0, 1, 1], [], []>} : vector<8x4xbf16>, vector<4x128xbf16>, vector<8x128xf32> -> vector<8x128xf32>
    %61 = arith.addf %52, %60 : vector<8x128xf32>
    %c6_i32 = arith.constant 6 : i32
    %62 = arith.addi %6, %c6_i32 : i32
    %c0_33 = arith.constant 0 : index
    %63 = arith.index_cast %62 : i32 to index
    %c0_34 = arith.constant 0 : index
    %64 = vector.load %arg2[%c0_33, %63, %c0_34] : memref<1x26x4xf32, #tpu.memory_space<vmem>>, vector<1x8x4xf32>
    %65 = vector.shape_cast %64 : vector<1x8x4xf32> to vector<8x4xf32>
    %66 = arith.truncf %65 : vector<8x4xf32> to vector<8x4xbf16>
    %c6 = arith.constant 6 : index
    %c0_35 = arith.constant 0 : index
    %c0_36 = arith.constant 0 : index
    %67 = vector.load %arg3[%c6, %c0_35, %c0_36] : memref<11x4x128xbf16, #tpu.memory_space<vmem>>, vector<1x4x128xbf16>
    %68 = vector.shape_cast %67 : vector<1x4x128xbf16> to vector<4x128xbf16>
    %cst_37 = arith.constant dense<0.000000e+00> : vector<8x128xf32>
    %69 = tpu.matmul %66, %68, %cst_37 {dimension_numbers = #tpu.dot_dimension_numbers<[1], [0], [0], [1], [0, 0, 1, 1], [], []>} : vector<8x4xbf16>, vector<4x128xbf16>, vector<8x128xf32> -> vector<8x128xf32>
    %70 = arith.addf %61, %69 : vector<8x128xf32>
    %c7_i32 = arith.constant 7 : i32
    %71 = arith.addi %6, %c7_i32 : i32
    %c0_38 = arith.constant 0 : index
    %72 = arith.index_cast %71 : i32 to index
    %c0_39 = arith.constant 0 : index
    %73 = vector.load %arg2[%c0_38, %72, %c0_39] : memref<1x26x4xf32, #tpu.memory_space<vmem>>, vector<1x8x4xf32>
    %74 = vector.shape_cast %73 : vector<1x8x4xf32> to vector<8x4xf32>
    %75 = arith.truncf %74 : vector<8x4xf32> to vector<8x4xbf16>
    %c7 = arith.constant 7 : index
    %c0_40 = arith.constant 0 : index
    %c0_41 = arith.constant 0 : index
    %76 = vector.load %arg3[%c7, %c0_40, %c0_41] : memref<11x4x128xbf16, #tpu.memory_space<vmem>>, vector<1x4x128xbf16>
    %77 = vector.shape_cast %76 : vector<1x4x128xbf16> to vector<4x128xbf16>
    %cst_42 = arith.constant dense<0.000000e+00> : vector<8x128xf32>
    %78 = tpu.matmul %75, %77, %cst_42 {dimension_numbers = #tpu.dot_dimension_numbers<[1], [0], [0], [1], [0, 0, 1, 1], [], []>} : vector<8x4xbf16>, vector<4x128xbf16>, vector<8x128xf32> -> vector<8x128xf32>
    %79 = arith.addf %70, %78 : vector<8x128xf32>
    %c8_i32_43 = arith.constant 8 : i32
    %80 = arith.addi %6, %c8_i32_43 : i32
    %c0_44 = arith.constant 0 : index
    %81 = arith.index_cast %80 : i32 to index
    %c0_45 = arith.constant 0 : index
    %82 = vector.load %arg2[%c0_44, %81, %c0_45] : memref<1x26x4xf32, #tpu.memory_space<vmem>>, vector<1x8x4xf32>
    %83 = vector.shape_cast %82 : vector<1x8x4xf32> to vector<8x4xf32>
    %84 = arith.truncf %83 : vector<8x4xf32> to vector<8x4xbf16>
    %c8 = arith.constant 8 : index
    %c0_46 = arith.constant 0 : index
    %c0_47 = arith.constant 0 : index
    %85 = vector.load %arg3[%c8, %c0_46, %c0_47] : memref<11x4x128xbf16, #tpu.memory_space<vmem>>, vector<1x4x128xbf16>
    %86 = vector.shape_cast %85 : vector<1x4x128xbf16> to vector<4x128xbf16>
    %cst_48 = arith.constant dense<0.000000e+00> : vector<8x128xf32>
    %87 = tpu.matmul %84, %86, %cst_48 {dimension_numbers = #tpu.dot_dimension_numbers<[1], [0], [0], [1], [0, 0, 1, 1], [], []>} : vector<8x4xbf16>, vector<4x128xbf16>, vector<8x128xf32> -> vector<8x128xf32>
    %88 = arith.addf %79, %87 : vector<8x128xf32>
    %c9_i32 = arith.constant 9 : i32
    %89 = arith.addi %6, %c9_i32 : i32
    %c0_49 = arith.constant 0 : index
    %90 = arith.index_cast %89 : i32 to index
    %c0_50 = arith.constant 0 : index
    %91 = vector.load %arg2[%c0_49, %90, %c0_50] : memref<1x26x4xf32, #tpu.memory_space<vmem>>, vector<1x8x4xf32>
    %92 = vector.shape_cast %91 : vector<1x8x4xf32> to vector<8x4xf32>
    %93 = arith.truncf %92 : vector<8x4xf32> to vector<8x4xbf16>
    %c9 = arith.constant 9 : index
    %c0_51 = arith.constant 0 : index
    %c0_52 = arith.constant 0 : index
    %94 = vector.load %arg3[%c9, %c0_51, %c0_52] : memref<11x4x128xbf16, #tpu.memory_space<vmem>>, vector<1x4x128xbf16>
    %95 = vector.shape_cast %94 : vector<1x4x128xbf16> to vector<4x128xbf16>
    %cst_53 = arith.constant dense<0.000000e+00> : vector<8x128xf32>
    %96 = tpu.matmul %93, %95, %cst_53 {dimension_numbers = #tpu.dot_dimension_numbers<[1], [0], [0], [1], [0, 0, 1, 1], [], []>} : vector<8x4xbf16>, vector<4x128xbf16>, vector<8x128xf32> -> vector<8x128xf32>
    %97 = arith.addf %88, %96 : vector<8x128xf32>
    %c10_i32 = arith.constant 10 : i32
    %98 = arith.addi %6, %c10_i32 : i32
    %c0_54 = arith.constant 0 : index
    %99 = arith.index_cast %98 : i32 to index
    %c0_55 = arith.constant 0 : index
    %100 = vector.load %arg2[%c0_54, %99, %c0_55] : memref<1x26x4xf32, #tpu.memory_space<vmem>>, vector<1x8x4xf32>
    %101 = vector.shape_cast %100 : vector<1x8x4xf32> to vector<8x4xf32>
    %102 = arith.truncf %101 : vector<8x4xf32> to vector<8x4xbf16>
    %c10 = arith.constant 10 : index
    %c0_56 = arith.constant 0 : index
    %c0_57 = arith.constant 0 : index
    %103 = vector.load %arg3[%c10, %c0_56, %c0_57] : memref<11x4x128xbf16, #tpu.memory_space<vmem>>, vector<1x4x128xbf16>
    %104 = vector.shape_cast %103 : vector<1x4x128xbf16> to vector<4x128xbf16>
    %cst_58 = arith.constant dense<0.000000e+00> : vector<8x128xf32>
    %105 = tpu.matmul %102, %104, %cst_58 {dimension_numbers = #tpu.dot_dimension_numbers<[1], [0], [0], [1], [0, 0, 1, 1], [], []>} : vector<8x4xbf16>, vector<4x128xbf16>, vector<8x128xf32> -> vector<8x128xf32>
    %106 = arith.addf %97, %105 : vector<8x128xf32>
    %c0_59 = arith.constant 0 : index
    %c0_60 = arith.constant 0 : index
    %107 = vector.load %arg4[%c0_59, %c0_60] : memref<1x128xf32, #tpu.memory_space<vmem>>, vector<1x128xf32>
    %108 = vector.broadcast %107 : vector<1x128xf32> to vector<8x128xf32>
    %109 = arith.addf %106, %108 : vector<8x128xf32>
    %110 = tpu.iota {dimensions = array<i32: 0>} : vector<8x128xi32>
    %111 = vector.broadcast %6 : i32 to vector<8x128xi32>
    %112 = arith.addi %111, %110 : vector<8x128xi32>
    %c16_i32 = arith.constant 16 : i32
    %113 = vector.broadcast %c16_i32 : i32 to vector<8x128xi32>
    %114 = arith.cmpi slt, %112, %113 : vector<8x128xi32>
    %cst_61 = arith.constant 0.000000e+00 : f32
    %115 = vector.broadcast %cst_61 : f32 to vector<8x128xf32>
    %116 = arith.select %114, %109, %115 : vector<8x128xi1>, vector<8x128xf32>
    %c0_62 = arith.constant 0 : index
    %c0_63 = arith.constant 0 : index
    %117 = vector.load %arg5[%c0_62, %c0_63] : memref<2x128xf32, #tpu.memory_space<vmem>>, vector<1x128xf32>
    %cst_64 = arith.constant dense<0.000000e+00> : vector<128xf32>
    %118 = vector.multi_reduction <add>, %116, %cst_64 [0] : vector<8x128xf32> to vector<128xf32>
    %119 = vector.shape_cast %118 : vector<128xf32> to vector<1x128xf32>
    %120 = arith.addf %117, %119 : vector<1x128xf32>
    %c0_65 = arith.constant 0 : index
    %c0_66 = arith.constant 0 : index
    %121 = vector.load %arg5[%c0_65, %c0_66] : memref<2x128xf32, #tpu.memory_space<vmem>>, vector<1x128xf32>
    tpu.vector_store %arg5[%c0_65, %c0_66], %120 {strides = array<i32>} : memref<2x128xf32, #tpu.memory_space<vmem>>, vector<1x128xf32>,
    %c1_67 = arith.constant 1 : index
    %c0_68 = arith.constant 0 : index
    %122 = vector.load %arg5[%c1_67, %c0_68] : memref<2x128xf32, #tpu.memory_space<vmem>>, vector<1x128xf32>
    %123 = arith.mulf %116, %116 : vector<8x128xf32>
    %cst_69 = arith.constant dense<0.000000e+00> : vector<128xf32>
    %124 = vector.multi_reduction <add>, %123, %cst_69 [0] : vector<8x128xf32> to vector<128xf32>
    %125 = vector.shape_cast %124 : vector<128xf32> to vector<1x128xf32>
    %126 = arith.addf %122, %125 : vector<1x128xf32>
    %c1_70 = arith.constant 1 : index
    %c0_71 = arith.constant 0 : index
    %127 = vector.load %arg5[%c1_70, %c0_71] : memref<2x128xf32, #tpu.memory_space<vmem>>, vector<1x128xf32>
    tpu.vector_store %arg5[%c1_70, %c0_71], %126 {strides = array<i32>} : memref<2x128xf32, #tpu.memory_space<vmem>>, vector<1x128xf32>,
    return
  }
  func.func @transform_0(%arg0: i32, %arg1: i32) -> (i32, i32, i32) {
    %c0_i32 = arith.constant 0 : i32
    %c0_i32_0 = arith.constant 0 : i32
    %c0_i32_1 = arith.constant 0 : i32
    return %arg0, %c0_i32, %c0_i32_0 : i32, i32, i32
  }
  func.func @transform_1(%arg0: i32, %arg1: i32) -> (i32, i32, i32) {
    %c0_i32 = arith.constant 0 : i32
    %c0_i32_0 = arith.constant 0 : i32
    %c0_i32_1 = arith.constant 0 : i32
    %c0_i32_2 = arith.constant 0 : i32
    return %c0_i32, %c0_i32_0, %c0_i32_1 : i32, i32, i32
  }
  func.func @transform_2(%arg0: i32, %arg1: i32) -> (i32, i32) {
    %c0_i32 = arith.constant 0 : i32
    %c0_i32_0 = arith.constant 0 : i32
    %c0_i32_1 = arith.constant 0 : i32
    return %c0_i32, %c0_i32_0 : i32, i32
  }
  func.func @transform_3(%arg0: i32, %arg1: i32) -> (i32, i32) {
    %c0_i32 = arith.constant 0 : i32
    %c0_i32_0 = arith.constant 0 : i32
    %c0_i32_1 = arith.constant 0 : i32
    return %c0_i32, %c0_i32_0 : i32, i32
  }
}

module attributes {stable_mosaic.version = 11 : i64} {
  func.func @_conv_stats_kernel(%arg0: i32, %arg1: i32, %arg2: memref<1x26x32xf32, #tpu.memory_space<vmem>>, %arg3: memref<11x32x128xbf16, #tpu.memory_space<vmem>>, %arg4: memref<1x128xf32, #tpu.memory_space<vmem>>, %arg5: memref<2x128xf32, #tpu.memory_space<vmem>>) attributes {dimension_semantics = [#tpu.dimension_semantics<arbitrary>, #tpu.dimension_semantics<arbitrary>], iteration_bounds = array<i64: 2, 2>, scalar_prefetch = 0 : i64, scratch_operands = 0 : i64, tpu.core_type = #tpu.core_type<tc>, window_params = [{transform_indices = @transform_0, window_bounds = array<i64: 1, 26, 32>}, {pipeline_mode = #tpu.pipeline_mode<synchronous>, transform_indices = @transform_1, window_bounds = array<i64: 11, 32, 128>}, {pipeline_mode = #tpu.pipeline_mode<synchronous>, transform_indices = @transform_2, window_bounds = array<i64: 1, 128>}, {pipeline_mode = #tpu.pipeline_mode<synchronous>, transform_indices = @transform_3, window_bounds = array<i64: 2, 128>}]} {
    %c0_i32 = arith.constant 0 : i32
    %0 = arith.cmpi eq, %arg0, %c0_i32 : i32
    %c0_i32_0 = arith.constant 0 : i32
    %1 = arith.cmpi eq, %arg1, %c0_i32_0 : i32
    %2 = arith.andi %0, %1 : i1
    %3 = arith.extui %2 : i1 to i32
    %c0_i32_1 = arith.constant 0 : i32
    %4 = arith.cmpi ne, %3, %c0_i32_1 : i32
    scf.if %4 {
      %cst_72 = arith.constant 0.000000e+00 : f32
      %128 = vector.broadcast %cst_72 : f32 to vector<2x128xf32>
      %c0_73 = arith.constant 0 : index
      %c0_74 = arith.constant 0 : index
      %129 = vector.load %arg5[%c0_73, %c0_74] : memref<2x128xf32, #tpu.memory_space<vmem>>, vector<2x128xf32>
      tpu.vector_store %arg5[%c0_73, %c0_74], %128 {strides = array<i32>} : memref<2x128xf32, #tpu.memory_space<vmem>>, vector<2x128xf32>,
    } else {
    }
    %c8_i32 = arith.constant 8 : i32
    %5 = arith.muli %arg1, %c8_i32 : i32
    %6 = tpu.assume_multiple %5, 8 : i32
    %cst = arith.constant 0.000000e+00 : f32
    %7 = vector.broadcast %cst : f32 to vector<8x128xf32>
    %c0_i32_2 = arith.constant 0 : i32
    %8 = arith.addi %6, %c0_i32_2 : i32
    %c0 = arith.constant 0 : index
    %9 = arith.index_cast %8 : i32 to index
    %c0_3 = arith.constant 0 : index
    %10 = vector.load %arg2[%c0, %9, %c0_3] : memref<1x26x32xf32, #tpu.memory_space<vmem>>, vector<1x8x32xf32>
    %11 = vector.shape_cast %10 : vector<1x8x32xf32> to vector<8x32xf32>
    %12 = arith.truncf %11 : vector<8x32xf32> to vector<8x32xbf16>
    %c0_4 = arith.constant 0 : index
    %c0_5 = arith.constant 0 : index
    %c0_6 = arith.constant 0 : index
    %13 = vector.load %arg3[%c0_4, %c0_5, %c0_6] : memref<11x32x128xbf16, #tpu.memory_space<vmem>>, vector<1x32x128xbf16>
    %14 = vector.shape_cast %13 : vector<1x32x128xbf16> to vector<32x128xbf16>
    %cst_7 = arith.constant dense<0.000000e+00> : vector<8x128xf32>
    %15 = tpu.matmul %12, %14, %cst_7 {dimension_numbers = #tpu.dot_dimension_numbers<[1], [0], [0], [1], [0, 0, 1, 1], [], []>} : vector<8x32xbf16>, vector<32x128xbf16>, vector<8x128xf32> -> vector<8x128xf32>
    %16 = arith.addf %7, %15 : vector<8x128xf32>
    %c1_i32 = arith.constant 1 : i32
    %17 = arith.addi %6, %c1_i32 : i32
    %c0_8 = arith.constant 0 : index
    %18 = arith.index_cast %17 : i32 to index
    %c0_9 = arith.constant 0 : index
    %19 = vector.load %arg2[%c0_8, %18, %c0_9] : memref<1x26x32xf32, #tpu.memory_space<vmem>>, vector<1x8x32xf32>
    %20 = vector.shape_cast %19 : vector<1x8x32xf32> to vector<8x32xf32>
    %21 = arith.truncf %20 : vector<8x32xf32> to vector<8x32xbf16>
    %c1 = arith.constant 1 : index
    %c0_10 = arith.constant 0 : index
    %c0_11 = arith.constant 0 : index
    %22 = vector.load %arg3[%c1, %c0_10, %c0_11] : memref<11x32x128xbf16, #tpu.memory_space<vmem>>, vector<1x32x128xbf16>
    %23 = vector.shape_cast %22 : vector<1x32x128xbf16> to vector<32x128xbf16>
    %cst_12 = arith.constant dense<0.000000e+00> : vector<8x128xf32>
    %24 = tpu.matmul %21, %23, %cst_12 {dimension_numbers = #tpu.dot_dimension_numbers<[1], [0], [0], [1], [0, 0, 1, 1], [], []>} : vector<8x32xbf16>, vector<32x128xbf16>, vector<8x128xf32> -> vector<8x128xf32>
    %25 = arith.addf %16, %24 : vector<8x128xf32>
    %c2_i32 = arith.constant 2 : i32
    %26 = arith.addi %6, %c2_i32 : i32
    %c0_13 = arith.constant 0 : index
    %27 = arith.index_cast %26 : i32 to index
    %c0_14 = arith.constant 0 : index
    %28 = vector.load %arg2[%c0_13, %27, %c0_14] : memref<1x26x32xf32, #tpu.memory_space<vmem>>, vector<1x8x32xf32>
    %29 = vector.shape_cast %28 : vector<1x8x32xf32> to vector<8x32xf32>
    %30 = arith.truncf %29 : vector<8x32xf32> to vector<8x32xbf16>
    %c2 = arith.constant 2 : index
    %c0_15 = arith.constant 0 : index
    %c0_16 = arith.constant 0 : index
    %31 = vector.load %arg3[%c2, %c0_15, %c0_16] : memref<11x32x128xbf16, #tpu.memory_space<vmem>>, vector<1x32x128xbf16>
    %32 = vector.shape_cast %31 : vector<1x32x128xbf16> to vector<32x128xbf16>
    %cst_17 = arith.constant dense<0.000000e+00> : vector<8x128xf32>
    %33 = tpu.matmul %30, %32, %cst_17 {dimension_numbers = #tpu.dot_dimension_numbers<[1], [0], [0], [1], [0, 0, 1, 1], [], []>} : vector<8x32xbf16>, vector<32x128xbf16>, vector<8x128xf32> -> vector<8x128xf32>
    %34 = arith.addf %25, %33 : vector<8x128xf32>
    %c3_i32 = arith.constant 3 : i32
    %35 = arith.addi %6, %c3_i32 : i32
    %c0_18 = arith.constant 0 : index
    %36 = arith.index_cast %35 : i32 to index
    %c0_19 = arith.constant 0 : index
    %37 = vector.load %arg2[%c0_18, %36, %c0_19] : memref<1x26x32xf32, #tpu.memory_space<vmem>>, vector<1x8x32xf32>
    %38 = vector.shape_cast %37 : vector<1x8x32xf32> to vector<8x32xf32>
    %39 = arith.truncf %38 : vector<8x32xf32> to vector<8x32xbf16>
    %c3 = arith.constant 3 : index
    %c0_20 = arith.constant 0 : index
    %c0_21 = arith.constant 0 : index
    %40 = vector.load %arg3[%c3, %c0_20, %c0_21] : memref<11x32x128xbf16, #tpu.memory_space<vmem>>, vector<1x32x128xbf16>
    %41 = vector.shape_cast %40 : vector<1x32x128xbf16> to vector<32x128xbf16>
    %cst_22 = arith.constant dense<0.000000e+00> : vector<8x128xf32>
    %42 = tpu.matmul %39, %41, %cst_22 {dimension_numbers = #tpu.dot_dimension_numbers<[1], [0], [0], [1], [0, 0, 1, 1], [], []>} : vector<8x32xbf16>, vector<32x128xbf16>, vector<8x128xf32> -> vector<8x128xf32>
    %43 = arith.addf %34, %42 : vector<8x128xf32>
    %c4_i32 = arith.constant 4 : i32
    %44 = arith.addi %6, %c4_i32 : i32
    %c0_23 = arith.constant 0 : index
    %45 = arith.index_cast %44 : i32 to index
    %c0_24 = arith.constant 0 : index
    %46 = vector.load %arg2[%c0_23, %45, %c0_24] : memref<1x26x32xf32, #tpu.memory_space<vmem>>, vector<1x8x32xf32>
    %47 = vector.shape_cast %46 : vector<1x8x32xf32> to vector<8x32xf32>
    %48 = arith.truncf %47 : vector<8x32xf32> to vector<8x32xbf16>
    %c4 = arith.constant 4 : index
    %c0_25 = arith.constant 0 : index
    %c0_26 = arith.constant 0 : index
    %49 = vector.load %arg3[%c4, %c0_25, %c0_26] : memref<11x32x128xbf16, #tpu.memory_space<vmem>>, vector<1x32x128xbf16>
    %50 = vector.shape_cast %49 : vector<1x32x128xbf16> to vector<32x128xbf16>
    %cst_27 = arith.constant dense<0.000000e+00> : vector<8x128xf32>
    %51 = tpu.matmul %48, %50, %cst_27 {dimension_numbers = #tpu.dot_dimension_numbers<[1], [0], [0], [1], [0, 0, 1, 1], [], []>} : vector<8x32xbf16>, vector<32x128xbf16>, vector<8x128xf32> -> vector<8x128xf32>
    %52 = arith.addf %43, %51 : vector<8x128xf32>
    %c5_i32 = arith.constant 5 : i32
    %53 = arith.addi %6, %c5_i32 : i32
    %c0_28 = arith.constant 0 : index
    %54 = arith.index_cast %53 : i32 to index
    %c0_29 = arith.constant 0 : index
    %55 = vector.load %arg2[%c0_28, %54, %c0_29] : memref<1x26x32xf32, #tpu.memory_space<vmem>>, vector<1x8x32xf32>
    %56 = vector.shape_cast %55 : vector<1x8x32xf32> to vector<8x32xf32>
    %57 = arith.truncf %56 : vector<8x32xf32> to vector<8x32xbf16>
    %c5 = arith.constant 5 : index
    %c0_30 = arith.constant 0 : index
    %c0_31 = arith.constant 0 : index
    %58 = vector.load %arg3[%c5, %c0_30, %c0_31] : memref<11x32x128xbf16, #tpu.memory_space<vmem>>, vector<1x32x128xbf16>
    %59 = vector.shape_cast %58 : vector<1x32x128xbf16> to vector<32x128xbf16>
    %cst_32 = arith.constant dense<0.000000e+00> : vector<8x128xf32>
    %60 = tpu.matmul %57, %59, %cst_32 {dimension_numbers = #tpu.dot_dimension_numbers<[1], [0], [0], [1], [0, 0, 1, 1], [], []>} : vector<8x32xbf16>, vector<32x128xbf16>, vector<8x128xf32> -> vector<8x128xf32>
    %61 = arith.addf %52, %60 : vector<8x128xf32>
    %c6_i32 = arith.constant 6 : i32
    %62 = arith.addi %6, %c6_i32 : i32
    %c0_33 = arith.constant 0 : index
    %63 = arith.index_cast %62 : i32 to index
    %c0_34 = arith.constant 0 : index
    %64 = vector.load %arg2[%c0_33, %63, %c0_34] : memref<1x26x32xf32, #tpu.memory_space<vmem>>, vector<1x8x32xf32>
    %65 = vector.shape_cast %64 : vector<1x8x32xf32> to vector<8x32xf32>
    %66 = arith.truncf %65 : vector<8x32xf32> to vector<8x32xbf16>
    %c6 = arith.constant 6 : index
    %c0_35 = arith.constant 0 : index
    %c0_36 = arith.constant 0 : index
    %67 = vector.load %arg3[%c6, %c0_35, %c0_36] : memref<11x32x128xbf16, #tpu.memory_space<vmem>>, vector<1x32x128xbf16>
    %68 = vector.shape_cast %67 : vector<1x32x128xbf16> to vector<32x128xbf16>
    %cst_37 = arith.constant dense<0.000000e+00> : vector<8x128xf32>
    %69 = tpu.matmul %66, %68, %cst_37 {dimension_numbers = #tpu.dot_dimension_numbers<[1], [0], [0], [1], [0, 0, 1, 1], [], []>} : vector<8x32xbf16>, vector<32x128xbf16>, vector<8x128xf32> -> vector<8x128xf32>
    %70 = arith.addf %61, %69 : vector<8x128xf32>
    %c7_i32 = arith.constant 7 : i32
    %71 = arith.addi %6, %c7_i32 : i32
    %c0_38 = arith.constant 0 : index
    %72 = arith.index_cast %71 : i32 to index
    %c0_39 = arith.constant 0 : index
    %73 = vector.load %arg2[%c0_38, %72, %c0_39] : memref<1x26x32xf32, #tpu.memory_space<vmem>>, vector<1x8x32xf32>
    %74 = vector.shape_cast %73 : vector<1x8x32xf32> to vector<8x32xf32>
    %75 = arith.truncf %74 : vector<8x32xf32> to vector<8x32xbf16>
    %c7 = arith.constant 7 : index
    %c0_40 = arith.constant 0 : index
    %c0_41 = arith.constant 0 : index
    %76 = vector.load %arg3[%c7, %c0_40, %c0_41] : memref<11x32x128xbf16, #tpu.memory_space<vmem>>, vector<1x32x128xbf16>
    %77 = vector.shape_cast %76 : vector<1x32x128xbf16> to vector<32x128xbf16>
    %cst_42 = arith.constant dense<0.000000e+00> : vector<8x128xf32>
    %78 = tpu.matmul %75, %77, %cst_42 {dimension_numbers = #tpu.dot_dimension_numbers<[1], [0], [0], [1], [0, 0, 1, 1], [], []>} : vector<8x32xbf16>, vector<32x128xbf16>, vector<8x128xf32> -> vector<8x128xf32>
    %79 = arith.addf %70, %78 : vector<8x128xf32>
    %c8_i32_43 = arith.constant 8 : i32
    %80 = arith.addi %6, %c8_i32_43 : i32
    %c0_44 = arith.constant 0 : index
    %81 = arith.index_cast %80 : i32 to index
    %c0_45 = arith.constant 0 : index
    %82 = vector.load %arg2[%c0_44, %81, %c0_45] : memref<1x26x32xf32, #tpu.memory_space<vmem>>, vector<1x8x32xf32>
    %83 = vector.shape_cast %82 : vector<1x8x32xf32> to vector<8x32xf32>
    %84 = arith.truncf %83 : vector<8x32xf32> to vector<8x32xbf16>
    %c8 = arith.constant 8 : index
    %c0_46 = arith.constant 0 : index
    %c0_47 = arith.constant 0 : index
    %85 = vector.load %arg3[%c8, %c0_46, %c0_47] : memref<11x32x128xbf16, #tpu.memory_space<vmem>>, vector<1x32x128xbf16>
    %86 = vector.shape_cast %85 : vector<1x32x128xbf16> to vector<32x128xbf16>
    %cst_48 = arith.constant dense<0.000000e+00> : vector<8x128xf32>
    %87 = tpu.matmul %84, %86, %cst_48 {dimension_numbers = #tpu.dot_dimension_numbers<[1], [0], [0], [1], [0, 0, 1, 1], [], []>} : vector<8x32xbf16>, vector<32x128xbf16>, vector<8x128xf32> -> vector<8x128xf32>
    %88 = arith.addf %79, %87 : vector<8x128xf32>
    %c9_i32 = arith.constant 9 : i32
    %89 = arith.addi %6, %c9_i32 : i32
    %c0_49 = arith.constant 0 : index
    %90 = arith.index_cast %89 : i32 to index
    %c0_50 = arith.constant 0 : index
    %91 = vector.load %arg2[%c0_49, %90, %c0_50] : memref<1x26x32xf32, #tpu.memory_space<vmem>>, vector<1x8x32xf32>
    %92 = vector.shape_cast %91 : vector<1x8x32xf32> to vector<8x32xf32>
    %93 = arith.truncf %92 : vector<8x32xf32> to vector<8x32xbf16>
    %c9 = arith.constant 9 : index
    %c0_51 = arith.constant 0 : index
    %c0_52 = arith.constant 0 : index
    %94 = vector.load %arg3[%c9, %c0_51, %c0_52] : memref<11x32x128xbf16, #tpu.memory_space<vmem>>, vector<1x32x128xbf16>
    %95 = vector.shape_cast %94 : vector<1x32x128xbf16> to vector<32x128xbf16>
    %cst_53 = arith.constant dense<0.000000e+00> : vector<8x128xf32>
    %96 = tpu.matmul %93, %95, %cst_53 {dimension_numbers = #tpu.dot_dimension_numbers<[1], [0], [0], [1], [0, 0, 1, 1], [], []>} : vector<8x32xbf16>, vector<32x128xbf16>, vector<8x128xf32> -> vector<8x128xf32>
    %97 = arith.addf %88, %96 : vector<8x128xf32>
    %c10_i32 = arith.constant 10 : i32
    %98 = arith.addi %6, %c10_i32 : i32
    %c0_54 = arith.constant 0 : index
    %99 = arith.index_cast %98 : i32 to index
    %c0_55 = arith.constant 0 : index
    %100 = vector.load %arg2[%c0_54, %99, %c0_55] : memref<1x26x32xf32, #tpu.memory_space<vmem>>, vector<1x8x32xf32>
    %101 = vector.shape_cast %100 : vector<1x8x32xf32> to vector<8x32xf32>
    %102 = arith.truncf %101 : vector<8x32xf32> to vector<8x32xbf16>
    %c10 = arith.constant 10 : index
    %c0_56 = arith.constant 0 : index
    %c0_57 = arith.constant 0 : index
    %103 = vector.load %arg3[%c10, %c0_56, %c0_57] : memref<11x32x128xbf16, #tpu.memory_space<vmem>>, vector<1x32x128xbf16>
    %104 = vector.shape_cast %103 : vector<1x32x128xbf16> to vector<32x128xbf16>
    %cst_58 = arith.constant dense<0.000000e+00> : vector<8x128xf32>
    %105 = tpu.matmul %102, %104, %cst_58 {dimension_numbers = #tpu.dot_dimension_numbers<[1], [0], [0], [1], [0, 0, 1, 1], [], []>} : vector<8x32xbf16>, vector<32x128xbf16>, vector<8x128xf32> -> vector<8x128xf32>
    %106 = arith.addf %97, %105 : vector<8x128xf32>
    %c0_59 = arith.constant 0 : index
    %c0_60 = arith.constant 0 : index
    %107 = vector.load %arg4[%c0_59, %c0_60] : memref<1x128xf32, #tpu.memory_space<vmem>>, vector<1x128xf32>
    %108 = vector.broadcast %107 : vector<1x128xf32> to vector<8x128xf32>
    %109 = arith.addf %106, %108 : vector<8x128xf32>
    %110 = tpu.iota {dimensions = array<i32: 0>} : vector<8x128xi32>
    %111 = vector.broadcast %6 : i32 to vector<8x128xi32>
    %112 = arith.addi %111, %110 : vector<8x128xi32>
    %c16_i32 = arith.constant 16 : i32
    %113 = vector.broadcast %c16_i32 : i32 to vector<8x128xi32>
    %114 = arith.cmpi slt, %112, %113 : vector<8x128xi32>
    %cst_61 = arith.constant 0.000000e+00 : f32
    %115 = vector.broadcast %cst_61 : f32 to vector<8x128xf32>
    %116 = arith.select %114, %109, %115 : vector<8x128xi1>, vector<8x128xf32>
    %c0_62 = arith.constant 0 : index
    %c0_63 = arith.constant 0 : index
    %117 = vector.load %arg5[%c0_62, %c0_63] : memref<2x128xf32, #tpu.memory_space<vmem>>, vector<1x128xf32>
    %cst_64 = arith.constant dense<0.000000e+00> : vector<128xf32>
    %118 = vector.multi_reduction <add>, %116, %cst_64 [0] : vector<8x128xf32> to vector<128xf32>
    %119 = vector.shape_cast %118 : vector<128xf32> to vector<1x128xf32>
    %120 = arith.addf %117, %119 : vector<1x128xf32>
    %c0_65 = arith.constant 0 : index
    %c0_66 = arith.constant 0 : index
    %121 = vector.load %arg5[%c0_65, %c0_66] : memref<2x128xf32, #tpu.memory_space<vmem>>, vector<1x128xf32>
    tpu.vector_store %arg5[%c0_65, %c0_66], %120 {strides = array<i32>} : memref<2x128xf32, #tpu.memory_space<vmem>>, vector<1x128xf32>,
    %c1_67 = arith.constant 1 : index
    %c0_68 = arith.constant 0 : index
    %122 = vector.load %arg5[%c1_67, %c0_68] : memref<2x128xf32, #tpu.memory_space<vmem>>, vector<1x128xf32>
    %123 = arith.mulf %116, %116 : vector<8x128xf32>
    %cst_69 = arith.constant dense<0.000000e+00> : vector<128xf32>
    %124 = vector.multi_reduction <add>, %123, %cst_69 [0] : vector<8x128xf32> to vector<128xf32>
    %125 = vector.shape_cast %124 : vector<128xf32> to vector<1x128xf32>
    %126 = arith.addf %122, %125 : vector<1x128xf32>
    %c1_70 = arith.constant 1 : index
    %c0_71 = arith.constant 0 : index
    %127 = vector.load %arg5[%c1_70, %c0_71] : memref<2x128xf32, #tpu.memory_space<vmem>>, vector<1x128xf32>
    tpu.vector_store %arg5[%c1_70, %c0_71], %126 {strides = array<i32>} : memref<2x128xf32, #tpu.memory_space<vmem>>, vector<1x128xf32>,
    return
  }
  func.func @transform_0(%arg0: i32, %arg1: i32) -> (i32, i32, i32) {
    %c0_i32 = arith.constant 0 : i32
    %c0_i32_0 = arith.constant 0 : i32
    %c0_i32_1 = arith.constant 0 : i32
    return %arg0, %c0_i32, %c0_i32_0 : i32, i32, i32
  }
  func.func @transform_1(%arg0: i32, %arg1: i32) -> (i32, i32, i32) {
    %c0_i32 = arith.constant 0 : i32
    %c0_i32_0 = arith.constant 0 : i32
    %c0_i32_1 = arith.constant 0 : i32
    %c0_i32_2 = arith.constant 0 : i32
    return %c0_i32, %c0_i32_0, %c0_i32_1 : i32, i32, i32
  }
  func.func @transform_2(%arg0: i32, %arg1: i32) -> (i32, i32) {
    %c0_i32 = arith.constant 0 : i32
    %c0_i32_0 = arith.constant 0 : i32
    %c0_i32_1 = arith.constant 0 : i32
    return %c0_i32, %c0_i32_0 : i32, i32
  }
  func.func @transform_3(%arg0: i32, %arg1: i32) -> (i32, i32) {
    %c0_i32 = arith.constant 0 : i32
    %c0_i32_0 = arith.constant 0 : i32
    %c0_i32_1 = arith.constant 0 : i32
    return %c0_i32, %c0_i32_0 : i32, i32
  }
}

module attributes {stable_mosaic.version = 11 : i64} {
  func.func @_conv_bn_relu_kernel(%arg0: i32, %arg1: i32, %arg2: memref<1x26x32xf32, #tpu.memory_space<vmem>>, %arg3: memref<11x32x128xbf16, #tpu.memory_space<vmem>>, %arg4: memref<1x128xf32, #tpu.memory_space<vmem>>, %arg5: memref<2x128xf32, #tpu.memory_space<vmem>>, %arg6: memref<1x128xf32, #tpu.memory_space<vmem>>, %arg7: memref<1x128xf32, #tpu.memory_space<vmem>>, %arg8: memref<1x8x128xf32, #tpu.memory_space<vmem>>) attributes {dimension_semantics = [#tpu.dimension_semantics<parallel>, #tpu.dimension_semantics<parallel>], iteration_bounds = array<i64: 2, 2>, scalar_prefetch = 0 : i64, scratch_operands = 0 : i64, tpu.core_type = #tpu.core_type<tc>, window_params = [{transform_indices = @transform_0, window_bounds = array<i64: 1, 26, 32>}, {pipeline_mode = #tpu.pipeline_mode<synchronous>, transform_indices = @transform_1, window_bounds = array<i64: 11, 32, 128>}, {pipeline_mode = #tpu.pipeline_mode<synchronous>, transform_indices = @transform_2, window_bounds = array<i64: 1, 128>}, {pipeline_mode = #tpu.pipeline_mode<synchronous>, transform_indices = @transform_3, window_bounds = array<i64: 2, 128>}, {pipeline_mode = #tpu.pipeline_mode<synchronous>, transform_indices = @transform_4, window_bounds = array<i64: 1, 128>}, {pipeline_mode = #tpu.pipeline_mode<synchronous>, transform_indices = @transform_5, window_bounds = array<i64: 1, 128>}, {transform_indices = @transform_6, window_bounds = array<i64: 1, 8, 128>}]} {
    %c8_i32 = arith.constant 8 : i32
    %0 = arith.muli %arg1, %c8_i32 : i32
    %1 = tpu.assume_multiple %0, 8 : i32
    %cst = arith.constant 0.000000e+00 : f32
    %2 = vector.broadcast %cst : f32 to vector<8x128xf32>
    %c0_i32 = arith.constant 0 : i32
    %3 = arith.addi %1, %c0_i32 : i32
    %c0 = arith.constant 0 : index
    %4 = arith.index_cast %3 : i32 to index
    %c0_0 = arith.constant 0 : index
    %5 = vector.load %arg2[%c0, %4, %c0_0] : memref<1x26x32xf32, #tpu.memory_space<vmem>>, vector<1x8x32xf32>
    %6 = vector.shape_cast %5 : vector<1x8x32xf32> to vector<8x32xf32>
    %7 = arith.truncf %6 : vector<8x32xf32> to vector<8x32xbf16>
    %c0_1 = arith.constant 0 : index
    %c0_2 = arith.constant 0 : index
    %c0_3 = arith.constant 0 : index
    %8 = vector.load %arg3[%c0_1, %c0_2, %c0_3] : memref<11x32x128xbf16, #tpu.memory_space<vmem>>, vector<1x32x128xbf16>
    %9 = vector.shape_cast %8 : vector<1x32x128xbf16> to vector<32x128xbf16>
    %cst_4 = arith.constant dense<0.000000e+00> : vector<8x128xf32>
    %10 = tpu.matmul %7, %9, %cst_4 {dimension_numbers = #tpu.dot_dimension_numbers<[1], [0], [0], [1], [0, 0, 1, 1], [], []>} : vector<8x32xbf16>, vector<32x128xbf16>, vector<8x128xf32> -> vector<8x128xf32>
    %11 = arith.addf %2, %10 : vector<8x128xf32>
    %c1_i32 = arith.constant 1 : i32
    %12 = arith.addi %1, %c1_i32 : i32
    %c0_5 = arith.constant 0 : index
    %13 = arith.index_cast %12 : i32 to index
    %c0_6 = arith.constant 0 : index
    %14 = vector.load %arg2[%c0_5, %13, %c0_6] : memref<1x26x32xf32, #tpu.memory_space<vmem>>, vector<1x8x32xf32>
    %15 = vector.shape_cast %14 : vector<1x8x32xf32> to vector<8x32xf32>
    %16 = arith.truncf %15 : vector<8x32xf32> to vector<8x32xbf16>
    %c1 = arith.constant 1 : index
    %c0_7 = arith.constant 0 : index
    %c0_8 = arith.constant 0 : index
    %17 = vector.load %arg3[%c1, %c0_7, %c0_8] : memref<11x32x128xbf16, #tpu.memory_space<vmem>>, vector<1x32x128xbf16>
    %18 = vector.shape_cast %17 : vector<1x32x128xbf16> to vector<32x128xbf16>
    %cst_9 = arith.constant dense<0.000000e+00> : vector<8x128xf32>
    %19 = tpu.matmul %16, %18, %cst_9 {dimension_numbers = #tpu.dot_dimension_numbers<[1], [0], [0], [1], [0, 0, 1, 1], [], []>} : vector<8x32xbf16>, vector<32x128xbf16>, vector<8x128xf32> -> vector<8x128xf32>
    %20 = arith.addf %11, %19 : vector<8x128xf32>
    %c2_i32 = arith.constant 2 : i32
    %21 = arith.addi %1, %c2_i32 : i32
    %c0_10 = arith.constant 0 : index
    %22 = arith.index_cast %21 : i32 to index
    %c0_11 = arith.constant 0 : index
    %23 = vector.load %arg2[%c0_10, %22, %c0_11] : memref<1x26x32xf32, #tpu.memory_space<vmem>>, vector<1x8x32xf32>
    %24 = vector.shape_cast %23 : vector<1x8x32xf32> to vector<8x32xf32>
    %25 = arith.truncf %24 : vector<8x32xf32> to vector<8x32xbf16>
    %c2 = arith.constant 2 : index
    %c0_12 = arith.constant 0 : index
    %c0_13 = arith.constant 0 : index
    %26 = vector.load %arg3[%c2, %c0_12, %c0_13] : memref<11x32x128xbf16, #tpu.memory_space<vmem>>, vector<1x32x128xbf16>
    %27 = vector.shape_cast %26 : vector<1x32x128xbf16> to vector<32x128xbf16>
    %cst_14 = arith.constant dense<0.000000e+00> : vector<8x128xf32>
    %28 = tpu.matmul %25, %27, %cst_14 {dimension_numbers = #tpu.dot_dimension_numbers<[1], [0], [0], [1], [0, 0, 1, 1], [], []>} : vector<8x32xbf16>, vector<32x128xbf16>, vector<8x128xf32> -> vector<8x128xf32>
    %29 = arith.addf %20, %28 : vector<8x128xf32>
    %c3_i32 = arith.constant 3 : i32
    %30 = arith.addi %1, %c3_i32 : i32
    %c0_15 = arith.constant 0 : index
    %31 = arith.index_cast %30 : i32 to index
    %c0_16 = arith.constant 0 : index
    %32 = vector.load %arg2[%c0_15, %31, %c0_16] : memref<1x26x32xf32, #tpu.memory_space<vmem>>, vector<1x8x32xf32>
    %33 = vector.shape_cast %32 : vector<1x8x32xf32> to vector<8x32xf32>
    %34 = arith.truncf %33 : vector<8x32xf32> to vector<8x32xbf16>
    %c3 = arith.constant 3 : index
    %c0_17 = arith.constant 0 : index
    %c0_18 = arith.constant 0 : index
    %35 = vector.load %arg3[%c3, %c0_17, %c0_18] : memref<11x32x128xbf16, #tpu.memory_space<vmem>>, vector<1x32x128xbf16>
    %36 = vector.shape_cast %35 : vector<1x32x128xbf16> to vector<32x128xbf16>
    %cst_19 = arith.constant dense<0.000000e+00> : vector<8x128xf32>
    %37 = tpu.matmul %34, %36, %cst_19 {dimension_numbers = #tpu.dot_dimension_numbers<[1], [0], [0], [1], [0, 0, 1, 1], [], []>} : vector<8x32xbf16>, vector<32x128xbf16>, vector<8x128xf32> -> vector<8x128xf32>
    %38 = arith.addf %29, %37 : vector<8x128xf32>
    %c4_i32 = arith.constant 4 : i32
    %39 = arith.addi %1, %c4_i32 : i32
    %c0_20 = arith.constant 0 : index
    %40 = arith.index_cast %39 : i32 to index
    %c0_21 = arith.constant 0 : index
    %41 = vector.load %arg2[%c0_20, %40, %c0_21] : memref<1x26x32xf32, #tpu.memory_space<vmem>>, vector<1x8x32xf32>
    %42 = vector.shape_cast %41 : vector<1x8x32xf32> to vector<8x32xf32>
    %43 = arith.truncf %42 : vector<8x32xf32> to vector<8x32xbf16>
    %c4 = arith.constant 4 : index
    %c0_22 = arith.constant 0 : index
    %c0_23 = arith.constant 0 : index
    %44 = vector.load %arg3[%c4, %c0_22, %c0_23] : memref<11x32x128xbf16, #tpu.memory_space<vmem>>, vector<1x32x128xbf16>
    %45 = vector.shape_cast %44 : vector<1x32x128xbf16> to vector<32x128xbf16>
    %cst_24 = arith.constant dense<0.000000e+00> : vector<8x128xf32>
    %46 = tpu.matmul %43, %45, %cst_24 {dimension_numbers = #tpu.dot_dimension_numbers<[1], [0], [0], [1], [0, 0, 1, 1], [], []>} : vector<8x32xbf16>, vector<32x128xbf16>, vector<8x128xf32> -> vector<8x128xf32>
    %47 = arith.addf %38, %46 : vector<8x128xf32>
    %c5_i32 = arith.constant 5 : i32
    %48 = arith.addi %1, %c5_i32 : i32
    %c0_25 = arith.constant 0 : index
    %49 = arith.index_cast %48 : i32 to index
    %c0_26 = arith.constant 0 : index
    %50 = vector.load %arg2[%c0_25, %49, %c0_26] : memref<1x26x32xf32, #tpu.memory_space<vmem>>, vector<1x8x32xf32>
    %51 = vector.shape_cast %50 : vector<1x8x32xf32> to vector<8x32xf32>
    %52 = arith.truncf %51 : vector<8x32xf32> to vector<8x32xbf16>
    %c5 = arith.constant 5 : index
    %c0_27 = arith.constant 0 : index
    %c0_28 = arith.constant 0 : index
    %53 = vector.load %arg3[%c5, %c0_27, %c0_28] : memref<11x32x128xbf16, #tpu.memory_space<vmem>>, vector<1x32x128xbf16>
    %54 = vector.shape_cast %53 : vector<1x32x128xbf16> to vector<32x128xbf16>
    %cst_29 = arith.constant dense<0.000000e+00> : vector<8x128xf32>
    %55 = tpu.matmul %52, %54, %cst_29 {dimension_numbers = #tpu.dot_dimension_numbers<[1], [0], [0], [1], [0, 0, 1, 1], [], []>} : vector<8x32xbf16>, vector<32x128xbf16>, vector<8x128xf32> -> vector<8x128xf32>
    %56 = arith.addf %47, %55 : vector<8x128xf32>
    %c6_i32 = arith.constant 6 : i32
    %57 = arith.addi %1, %c6_i32 : i32
    %c0_30 = arith.constant 0 : index
    %58 = arith.index_cast %57 : i32 to index
    %c0_31 = arith.constant 0 : index
    %59 = vector.load %arg2[%c0_30, %58, %c0_31] : memref<1x26x32xf32, #tpu.memory_space<vmem>>, vector<1x8x32xf32>
    %60 = vector.shape_cast %59 : vector<1x8x32xf32> to vector<8x32xf32>
    %61 = arith.truncf %60 : vector<8x32xf32> to vector<8x32xbf16>
    %c6 = arith.constant 6 : index
    %c0_32 = arith.constant 0 : index
    %c0_33 = arith.constant 0 : index
    %62 = vector.load %arg3[%c6, %c0_32, %c0_33] : memref<11x32x128xbf16, #tpu.memory_space<vmem>>, vector<1x32x128xbf16>
    %63 = vector.shape_cast %62 : vector<1x32x128xbf16> to vector<32x128xbf16>
    %cst_34 = arith.constant dense<0.000000e+00> : vector<8x128xf32>
    %64 = tpu.matmul %61, %63, %cst_34 {dimension_numbers = #tpu.dot_dimension_numbers<[1], [0], [0], [1], [0, 0, 1, 1], [], []>} : vector<8x32xbf16>, vector<32x128xbf16>, vector<8x128xf32> -> vector<8x128xf32>
    %65 = arith.addf %56, %64 : vector<8x128xf32>
    %c7_i32 = arith.constant 7 : i32
    %66 = arith.addi %1, %c7_i32 : i32
    %c0_35 = arith.constant 0 : index
    %67 = arith.index_cast %66 : i32 to index
    %c0_36 = arith.constant 0 : index
    %68 = vector.load %arg2[%c0_35, %67, %c0_36] : memref<1x26x32xf32, #tpu.memory_space<vmem>>, vector<1x8x32xf32>
    %69 = vector.shape_cast %68 : vector<1x8x32xf32> to vector<8x32xf32>
    %70 = arith.truncf %69 : vector<8x32xf32> to vector<8x32xbf16>
    %c7 = arith.constant 7 : index
    %c0_37 = arith.constant 0 : index
    %c0_38 = arith.constant 0 : index
    %71 = vector.load %arg3[%c7, %c0_37, %c0_38] : memref<11x32x128xbf16, #tpu.memory_space<vmem>>, vector<1x32x128xbf16>
    %72 = vector.shape_cast %71 : vector<1x32x128xbf16> to vector<32x128xbf16>
    %cst_39 = arith.constant dense<0.000000e+00> : vector<8x128xf32>
    %73 = tpu.matmul %70, %72, %cst_39 {dimension_numbers = #tpu.dot_dimension_numbers<[1], [0], [0], [1], [0, 0, 1, 1], [], []>} : vector<8x32xbf16>, vector<32x128xbf16>, vector<8x128xf32> -> vector<8x128xf32>
    %74 = arith.addf %65, %73 : vector<8x128xf32>
    %c8_i32_40 = arith.constant 8 : i32
    %75 = arith.addi %1, %c8_i32_40 : i32
    %c0_41 = arith.constant 0 : index
    %76 = arith.index_cast %75 : i32 to index
    %c0_42 = arith.constant 0 : index
    %77 = vector.load %arg2[%c0_41, %76, %c0_42] : memref<1x26x32xf32, #tpu.memory_space<vmem>>, vector<1x8x32xf32>
    %78 = vector.shape_cast %77 : vector<1x8x32xf32> to vector<8x32xf32>
    %79 = arith.truncf %78 : vector<8x32xf32> to vector<8x32xbf16>
    %c8 = arith.constant 8 : index
    %c0_43 = arith.constant 0 : index
    %c0_44 = arith.constant 0 : index
    %80 = vector.load %arg3[%c8, %c0_43, %c0_44] : memref<11x32x128xbf16, #tpu.memory_space<vmem>>, vector<1x32x128xbf16>
    %81 = vector.shape_cast %80 : vector<1x32x128xbf16> to vector<32x128xbf16>
    %cst_45 = arith.constant dense<0.000000e+00> : vector<8x128xf32>
    %82 = tpu.matmul %79, %81, %cst_45 {dimension_numbers = #tpu.dot_dimension_numbers<[1], [0], [0], [1], [0, 0, 1, 1], [], []>} : vector<8x32xbf16>, vector<32x128xbf16>, vector<8x128xf32> -> vector<8x128xf32>
    %83 = arith.addf %74, %82 : vector<8x128xf32>
    %c9_i32 = arith.constant 9 : i32
    %84 = arith.addi %1, %c9_i32 : i32
    %c0_46 = arith.constant 0 : index
    %85 = arith.index_cast %84 : i32 to index
    %c0_47 = arith.constant 0 : index
    %86 = vector.load %arg2[%c0_46, %85, %c0_47] : memref<1x26x32xf32, #tpu.memory_space<vmem>>, vector<1x8x32xf32>
    %87 = vector.shape_cast %86 : vector<1x8x32xf32> to vector<8x32xf32>
    %88 = arith.truncf %87 : vector<8x32xf32> to vector<8x32xbf16>
    %c9 = arith.constant 9 : index
    %c0_48 = arith.constant 0 : index
    %c0_49 = arith.constant 0 : index
    %89 = vector.load %arg3[%c9, %c0_48, %c0_49] : memref<11x32x128xbf16, #tpu.memory_space<vmem>>, vector<1x32x128xbf16>
    %90 = vector.shape_cast %89 : vector<1x32x128xbf16> to vector<32x128xbf16>
    %cst_50 = arith.constant dense<0.000000e+00> : vector<8x128xf32>
    %91 = tpu.matmul %88, %90, %cst_50 {dimension_numbers = #tpu.dot_dimension_numbers<[1], [0], [0], [1], [0, 0, 1, 1], [], []>} : vector<8x32xbf16>, vector<32x128xbf16>, vector<8x128xf32> -> vector<8x128xf32>
    %92 = arith.addf %83, %91 : vector<8x128xf32>
    %c10_i32 = arith.constant 10 : i32
    %93 = arith.addi %1, %c10_i32 : i32
    %c0_51 = arith.constant 0 : index
    %94 = arith.index_cast %93 : i32 to index
    %c0_52 = arith.constant 0 : index
    %95 = vector.load %arg2[%c0_51, %94, %c0_52] : memref<1x26x32xf32, #tpu.memory_space<vmem>>, vector<1x8x32xf32>
    %96 = vector.shape_cast %95 : vector<1x8x32xf32> to vector<8x32xf32>
    %97 = arith.truncf %96 : vector<8x32xf32> to vector<8x32xbf16>
    %c10 = arith.constant 10 : index
    %c0_53 = arith.constant 0 : index
    %c0_54 = arith.constant 0 : index
    %98 = vector.load %arg3[%c10, %c0_53, %c0_54] : memref<11x32x128xbf16, #tpu.memory_space<vmem>>, vector<1x32x128xbf16>
    %99 = vector.shape_cast %98 : vector<1x32x128xbf16> to vector<32x128xbf16>
    %cst_55 = arith.constant dense<0.000000e+00> : vector<8x128xf32>
    %100 = tpu.matmul %97, %99, %cst_55 {dimension_numbers = #tpu.dot_dimension_numbers<[1], [0], [0], [1], [0, 0, 1, 1], [], []>} : vector<8x32xbf16>, vector<32x128xbf16>, vector<8x128xf32> -> vector<8x128xf32>
    %101 = arith.addf %92, %100 : vector<8x128xf32>
    %c0_56 = arith.constant 0 : index
    %c0_57 = arith.constant 0 : index
    %102 = vector.load %arg4[%c0_56, %c0_57] : memref<1x128xf32, #tpu.memory_space<vmem>>, vector<1x128xf32>
    %103 = vector.broadcast %102 : vector<1x128xf32> to vector<8x128xf32>
    %104 = arith.addf %101, %103 : vector<8x128xf32>
    %c0_58 = arith.constant 0 : index
    %c0_59 = arith.constant 0 : index
    %105 = vector.load %arg5[%c0_58, %c0_59] : memref<2x128xf32, #tpu.memory_space<vmem>>, vector<1x128xf32>
    %cst_60 = arith.constant 3.125000e-02 : f32
    %106 = vector.broadcast %cst_60 : f32 to vector<1x128xf32>
    %107 = arith.mulf %105, %106 : vector<1x128xf32>
    %c1_61 = arith.constant 1 : index
    %c0_62 = arith.constant 0 : index
    %108 = vector.load %arg5[%c1_61, %c0_62] : memref<2x128xf32, #tpu.memory_space<vmem>>, vector<1x128xf32>
    %cst_63 = arith.constant 3.125000e-02 : f32
    %109 = vector.broadcast %cst_63 : f32 to vector<1x128xf32>
    %110 = arith.mulf %108, %109 : vector<1x128xf32>
    %111 = arith.mulf %107, %107 : vector<1x128xf32>
    %112 = arith.subf %110, %111 : vector<1x128xf32>
    %cst_64 = arith.constant 0.000000e+00 : f32
    %113 = vector.broadcast %cst_64 : f32 to vector<1x128xf32>
    %114 = arith.maximumf %112, %113 : vector<1x128xf32>
    %c0_65 = arith.constant 0 : index
    %c0_66 = arith.constant 0 : index
    %115 = vector.load %arg6[%c0_65, %c0_66] : memref<1x128xf32, #tpu.memory_space<vmem>>, vector<1x128xf32>
    %cst_67 = arith.constant 9.99999974E-6 : f32
    %116 = vector.broadcast %cst_67 : f32 to vector<1x128xf32>
    %117 = arith.addf %114, %116 : vector<1x128xf32>
    %118 = math.rsqrt %117 : vector<1x128xf32>
    %119 = arith.mulf %115, %118 : vector<1x128xf32>
    %c0_68 = arith.constant 0 : index
    %c0_69 = arith.constant 0 : index
    %120 = vector.load %arg7[%c0_68, %c0_69] : memref<1x128xf32, #tpu.memory_space<vmem>>, vector<1x128xf32>
    %121 = arith.mulf %107, %119 : vector<1x128xf32>
    %122 = arith.subf %120, %121 : vector<1x128xf32>
    %123 = vector.broadcast %119 : vector<1x128xf32> to vector<8x128xf32>
    %124 = arith.mulf %104, %123 : vector<8x128xf32>
    %125 = vector.broadcast %122 : vector<1x128xf32> to vector<8x128xf32>
    %126 = arith.addf %124, %125 : vector<8x128xf32>
    %cst_70 = arith.constant 0.000000e+00 : f32
    %127 = vector.broadcast %cst_70 : f32 to vector<8x128xf32>
    %128 = arith.maximumf %126, %127 : vector<8x128xf32>
    %c0_71 = arith.constant 0 : index
    %c0_72 = arith.constant 0 : index
    %c0_73 = arith.constant 0 : index
    %129 = vector.load %arg8[%c0_71, %c0_72, %c0_73] : memref<1x8x128xf32, #tpu.memory_space<vmem>>, vector<1x8x128xf32>
    %130 = vector.shape_cast %129 : vector<1x8x128xf32> to vector<8x128xf32>
    %131 = vector.shape_cast %128 : vector<8x128xf32> to vector<1x8x128xf32>
    tpu.vector_store %arg8[%c0_71, %c0_72, %c0_73], %131 {strides = array<i32>} : memref<1x8x128xf32, #tpu.memory_space<vmem>>, vector<1x8x128xf32>,
    return
  }
  func.func @transform_0(%arg0: i32, %arg1: i32) -> (i32, i32, i32) {
    %c0_i32 = arith.constant 0 : i32
    %c0_i32_0 = arith.constant 0 : i32
    %c0_i32_1 = arith.constant 0 : i32
    return %arg0, %c0_i32, %c0_i32_0 : i32, i32, i32
  }
  func.func @transform_1(%arg0: i32, %arg1: i32) -> (i32, i32, i32) {
    %c0_i32 = arith.constant 0 : i32
    %c0_i32_0 = arith.constant 0 : i32
    %c0_i32_1 = arith.constant 0 : i32
    %c0_i32_2 = arith.constant 0 : i32
    return %c0_i32, %c0_i32_0, %c0_i32_1 : i32, i32, i32
  }
  func.func @transform_2(%arg0: i32, %arg1: i32) -> (i32, i32) {
    %c0_i32 = arith.constant 0 : i32
    %c0_i32_0 = arith.constant 0 : i32
    %c0_i32_1 = arith.constant 0 : i32
    return %c0_i32, %c0_i32_0 : i32, i32
  }
  func.func @transform_3(%arg0: i32, %arg1: i32) -> (i32, i32) {
    %c0_i32 = arith.constant 0 : i32
    %c0_i32_0 = arith.constant 0 : i32
    %c0_i32_1 = arith.constant 0 : i32
    return %c0_i32, %c0_i32_0 : i32, i32
  }
  func.func @transform_4(%arg0: i32, %arg1: i32) -> (i32, i32) {
    %c0_i32 = arith.constant 0 : i32
    %c0_i32_0 = arith.constant 0 : i32
    %c0_i32_1 = arith.constant 0 : i32
    return %c0_i32, %c0_i32_0 : i32, i32
  }
  func.func @transform_5(%arg0: i32, %arg1: i32) -> (i32, i32) {
    %c0_i32 = arith.constant 0 : i32
    %c0_i32_0 = arith.constant 0 : i32
    %c0_i32_1 = arith.constant 0 : i32
    return %c0_i32, %c0_i32_0 : i32, i32
  }
  func.func @transform_6(%arg0: i32, %arg1: i32) -> (i32, i32, i32) {
    %c0_i32 = arith.constant 0 : i32
    %c0_i32_0 = arith.constant 0 : i32
    return %arg0, %arg1, %c0_i32 : i32, i32, i32
  }
}

</mosaic_0001>

<bundles_post_ra>
// kernel: _lambda_.9
= control target key start
LH: loop header
LB: loop body
LE: loop exit
PB: predicated region body
PF: predicated region fallthrough
CT: control target
= control target key end

     0   :  { %s1269_s21 = smov 0   ;;  %s1271_s22 = smov 0   ;;  %s1450_s0 = inlined_call_operand.vmem [shape: f32[2,26,4], index: 0, kind: input, shape index: {}]   ;;  %s1451_s1 = inlined_call_operand.vmem [shape: bf16[11,4,128], index: 1, kind: input, shape index: {}]   ;;  %s1452_s2 = inlined_call_operand.vmem [shape: f32[1,128], index: 2, kind: input, shape index: {}]   ;;  %s1453_s3 = inlined_call_operand.vmem [shape: f32[2,128], index: 3, kind: input, shape index: {}]   ;;  %s1454_s4 = inlined_call_operand.vmem [shape: f32[1,128], index: 4, kind: input, shape index: {}]   ;;  %s1455_s5 = inlined_call_operand.vmem [shape: f32[1,128], index: 5, kind: input, shape index: {}]   ;;  %s1456_s6 = inlined_call_operand.vmem [shape: f32[2,16,128], index: 6, kind: output, shape index: {}]  }
   0x1   :  { %s1273_s23 = smov 0   ;;  %s1275_s24 = smov 0  }
   0x2   :  { %s1277_s25 = smov 0  }
   0x3 LB: > { %s25_s26 = sadd.s32 1, %s1222_s23  ;;  %s28_s27 = sadd.s32 1, %s1226_s24  ;;  %s1230_s25 = sphi %s1277_s25, %s16_s25   ;;  %s1226_s24 = sphi %s1275_s24, %s1460_s24   ;;  %s1222_s23 = sphi %s1273_s23, %s1459_s23   ;;  %s1218_s22 = sphi %s1271_s22, %s1458_s22   ;;  %s1214_s21 = sphi %s1269_s21, %s1457_s21  }
   0x4   : > { %p26_p0 = scmp.ge.s32.totalorder %s25_s26, 2  ;;  %p1009_p1 = scmp.ge.s32.totalorder %s1230_s25, 1 }
   0x5   : > { %p226_p2 = scmp.lt.s32.totalorder %s1230_s25, 5 }
   0x6   : > { %s1462_s26 = smov (%p26_p0, %s25_s26), 0  ;;  %s1464_s27 = smov (!%p26_p0, %s28_s27), %s1226_s24 }
   0x7   : > { %p227_p3 = pnand %p1009_p1, %p226_p2  ;;  %p30_p4 = scmp.ge.s32.totalorder %s1464_s27, 2 }
   0x8   : > { %v1017_v0 = vld [vmem:[%s1451_s1 + $0x2] sm:$0x3] (!%p227_p3)  ;;  %vm288_vm0 = vcmask (!%p227_p3), 1041408   ;;  %v277_v1 = vld [vmem:[%s1451_s1] sm:$0x3] (!%p227_p3)  ;;  %v1232_v2 = vmov (!%p227_p3), 0.0  }
   0x9   : > { %s1466_s27 = smov (%p30_p4, %s1464_s27), 0  ;;  %230 = sbr.rel (%p227_p3) target bundleno = 286 (0x11e), region = 44 }
   0xa   : > { %1082 = vmatprep.subr.bf16.mxu0 (!%p227_p3), %v1232_v2  ;;  %v290_v3 = vsel (!%p227_p3), %vm288_vm0, %v1017_v0, 0  ;;  %1088 = vmatprep.subr.bf16.mxu1 (!%p227_p3), %v1232_v2  ;;  %v336_v4 = vsel (!%p227_p3), %vm288_vm0, %v277_v1, 0  ;;  %p259_p5 = scmp.lt.s32.totalorder (!%p227_p3), %s1218_s22, 1  ;;  %vm1233_vm1 = vmmov (!%p227_p3), 0   ;;  %s1014_s8 = sshll.u32 (!%p227_p3), %s1214_s21, 3  ;;  %vm284_vm2 = vcmask (!%p227_p3), 31744  }
   0xb   : > { %1083 = vmatpush3.bf16.msra.mxu0 (!%p227_p3), %v290_v3  ;;  %1089 = vmatpush3.bf16.msra.mxu1 (!%p227_p3), %v336_v4  ;;  %v1022_v5 = vld [vmem:[%s1451_s1 + $0x4] sm:$0x3] (!%p227_p3)  ;;  %v1026_v6 = vld [vmem:[%s1451_s1 + $0x6] sm:$0x3] (!%p227_p3)  ;;  %v1030_v15 = vld [vmem:[%s1451_s1 + $0x8] sm:$0x3] (!%p227_p3) }
   0xc   : > { %1084 = vmatprep.mubr.msk.bf16.mxu0 (!%p227_p3), %vm1233_vm1, %v1232_v2  ;;  %1090 = vmatprep.mubr.msk.bf16.mxu1 (!%p227_p3), %vm1233_vm1, %v1232_v2  ;;  %v388_v11 = vsel (!%p227_p3), %vm288_vm0, %v1022_v5, 0  ;;  %v441_v12 = vsel (!%p227_p3), %vm288_vm0, %v1026_v6, 0  ;;  %v1034_v16 = vld [vmem:[%s1451_s1 + $0xa] sm:$0x3] (!%p227_p3)  ;;  %v494_v19 = vsel (!%p227_p3), %vm288_vm0, %v1030_v15, 0  ;;  %p266_p6 = scmp.lt.s32.totalorder (!%p227_p3), %s1214_s21, 1 }
   0xd   : > { %1094 = vmatprep.subr.bf16.mxu0 (!%p227_p3), %v1232_v2  ;;  %1100 = vmatprep.subr.bf16.mxu1 (!%p227_p3), %v1232_v2  ;;  %v547_v20 = vsel (!%p227_p3), %vm288_vm0, %v1034_v16, 0  ;;  %v1038_v23 = vld [vmem:[%s1451_s1 + $0xc] sm:$0x3] (!%p227_p3)  ;;  %v1042_v24 = vld [vmem:[%s1451_s1 + $0xe] sm:$0x3] (!%p227_p3) }
   0xe   : > { %v600_v27 = vsel (!%p227_p3), %vm288_vm0, %v1038_v23, 0  ;;  %v653_v28 = vsel (!%p227_p3), %vm288_vm0, %v1042_v24, 0  ;;  %v1046_v31 = vld [vmem:[%s1451_s1 + $0x10] sm:$0x3] (!%p227_p3)  ;;  %v1050_v32 = vld [vmem:[%s1451_s1 + $0x12] sm:$0x3] (!%p227_p3) }
   0xf   : > { %v706_v35 = vsel (!%p227_p3), %vm288_vm0, %v1046_v31, 0  ;;  %v759_v36 = vsel (!%p227_p3), %vm288_vm0, %v1050_v32, 0  ;;  %v1054_v39 = vld [vmem:[%s1451_s1 + $0x14] sm:$0x3] (!%p227_p3)  ;;  %v863_v45 = vld [vmem:[%s1453_s3] sm:$0x1] (!%p227_p3) }
  0x10   : > { %s1468_s22 = smov (!%p259_p5, %s1218_s22), 1  ;;  %v812_v42 = vsel %vm288_vm0, %v1054_v39, 0  ;;  %v1412_v46 = vmul.f32 0.03125, %v863_v45  ;;  %v865_v47 = vld [vmem:[%s1453_s3 + $0x1] sm:$0x1]  ;;  %s1470_s21 = smov (!%p266_p6, %s1214_s21), 1 }
  0x11   : > { %s1059_s9 = sshll.u32 %s1468_s22, 5  ;;  %v866_v55 = vmul.f32 0.03125, %v865_v47  ;;  %s1012_s30 = sshll.u32 %s1468_s22, 1 }
  0x12   : > { %s263_s12 = scalar_lea.vmem %s1450_s0, %s1059_s9  ;;  %v867_v56 = vmul.f32 %v1412_v46, %v1412_v46  ;;  %s269_s9 = sadd.s32 %s1012_s30, %s1470_s21 }
  0x13   : > { %s1330_s17 = scalar_lea.vmem %s263_s12, %s1014_s8  ;;  %s1013_s10 = sshll.u32 %s269_s9, 3 }
  0x14   : > { %v1016_v7 = vld [vmem:[%s1330_s17 + $0x1] sm:$0xff]  ;;  %v1049_v38 = vld [vmem:[%s1330_s17 + $0x9] sm:$0xff]  ;;  %v868_v59 = vsub.f32 %v866_v55, %v867_v56  ;;  %s271_s22 = scalar_lea.vmem %s1456_s6, %s1013_s10 }
  0x15   : > { %v275_v8 = vld [vmem:[%s1330_s17] sm:$0xff]  ;;  %v281_v9 = vpack.c.bf16 %v1016_v7, %v1016_v7  ;;  %v1045_v37 = vld [vmem:[%s1330_s17 + $0x8] sm:$0xff]  ;;  %v752_v41 = vpack.c.bf16 %v1049_v38, %v1049_v38 }
  0x16   : > { %v276_v10 = vpack.c.bf16 %v275_v8, %v275_v8  ;;  %v1021_v13 = vld [vmem:[%s1330_s17 + $0x2] sm:$0xff]  ;;  %v699_v40 = vpack.c.bf16 %v1045_v37, %v1045_v37  ;;  %v1053_v43 = vld [vmem:[%s1330_s17 + $0xa] sm:$0xff]  ;;  %v869_v3 = vmax.f32 %v868_v59, 0.0 }
  0x17   : > { %1085 = vmatmul.mubr.msk.bf16.vlgmr.msra.gmra.mrb[0].mxu0 %vm284_vm2, %v281_v9  ;;  %v1025_v14 = vld [vmem:[%s1330_s17 + $0x3] sm:$0xff]  ;;  %v381_v17 = vpack.c.bf16 %v1021_v13, %v1021_v13  ;;  %v805_v44 = vpack.c.bf16 %v1053_v43, %v1053_v43 }
  0x18   : > { %1091 = vmatmul.mubr.msk.bf16.vlgmr.msra.gmra.mrb[0].mxu1 %vm284_vm2, %v276_v10  ;;  %1095 = vmatpush3.bf16.msra.mxu0 %v388_v11  ;;  %v434_v18 = vpack.c.bf16 %v1025_v14, %v1025_v14  ;;  %v1029_v21 = vld [vmem:[%s1330_s17 + $0x4] sm:$0xff]  ;;  %v871_v7 = vadd.f32 1e-05, %v869_v3 }
  0x19   : > { %1101 = vmatpush3.bf16.msra.mxu1 %v441_v12  ;;  %1096 = vmatprep.mubr.msk.bf16.mxu0 %vm1233_vm1, %v1232_v2  ;;  %v1033_v22 = vld [vmem:[%s1330_s17 + $0x5] sm:$0xff]  ;;  %v487_v25 = vpack.c.bf16 %v1029_v21, %v1029_v21 }
  0x1a   : > { %1106 = vmatprep.subr.bf16.mxu0 %v1232_v2  ;;  %1102 = vmatprep.mubr.msk.bf16.mxu1 %vm1233_vm1, %v1232_v2  ;;  %v540_v26 = vpack.c.bf16 %v1033_v22, %v1033_v22  ;;  %v1037_v29 = vld [vmem:[%s1330_s17 + $0x6] sm:$0xff]  ;;  %1190 = vrsqrt.f32 %v871_v7 }
  0x1b   : > { %1112 = vmatprep.subr.bf16.mxu1 %v1232_v2  ;;  %v1041_v30 = vld [vmem:[%s1330_s17 + $0x7] sm:$0xff]  ;;  %v593_v33 = vpack.c.bf16 %v1037_v29, %v1037_v29  ;;  %v870_v29 = vld [vmem:[%s1454_s4] sm:$0x1] }
  0x1c   : > { %v646_v34 = vpack.c.bf16 %v1041_v30, %v1041_v30  ;;  %v878_v30 = vlaneseq }
  0x1e   : > { %v879_v37 = vshrl.u32 %v878_v30, 7 }
  0x1f   : > { %1097 = vmatmul.mubr.msk.bf16.vlgmr.msra.gmra.mrb[4].mxu0 %vm284_vm2, %v381_v17 }
  0x20   : > { %1103 = vmatmul.mubr.msk.bf16.vlgmr.msra.gmra.mrb[4].mxu1 %vm284_vm2, %v434_v18  ;;  %1107 = vmatpush3.bf16.msra.mxu0 %v494_v19  ;;  %v880_v45 = vsub.s32 0, %v879_v37 }
  0x21   : > { %1113 = vmatpush3.bf16.msra.mxu1 %v547_v20  ;;  %1108 = vmatprep.mubr.msk.bf16.mxu0 %vm1233_vm1, %v1232_v2 }
  0x22   : > { %1118 = vmatprep.subr.bf16.mxu0 %v1232_v2  ;;  %1114 = vmatprep.mubr.msk.bf16.mxu1 %vm1233_vm1, %v1232_v2 }
  0x23   : > { %1124 = vmatprep.subr.bf16.mxu1 %v1232_v2 }
  0x27   : > { %1109 = vmatmul.mubr.msk.bf16.vlgmr.msra.gmra.mrb[8].mxu0 %vm284_vm2, %v487_v25 }
  0x28   : > { %1115 = vmatmul.mubr.msk.bf16.vlgmr.msra.gmra.mrb[8].mxu1 %vm284_vm2, %v540_v26  ;;  %1119 = vmatpush3.bf16.msra.mxu0 %v600_v27 }
  0x29   : > { %1125 = vmatpush3.bf16.msra.mxu1 %v653_v28  ;;  %1120 = vmatprep.mubr.msk.bf16.mxu0 %vm1233_vm1, %v1232_v2  ;;  %v1191_v28 = vpop.eup %1190 }
  0x2a   : > { %1130 = vmatprep.subr.bf16.mxu0 %v1232_v2  ;;  %1126 = vmatprep.mubr.msk.bf16.mxu1 %vm1233_vm1, %v1232_v2  ;;  %v873_v31 = vmul.f32 %v1191_v28, %v870_v29 }
  0x2b   : > { %1136 = vmatprep.subr.bf16.mxu1 %v1232_v2 }
  0x2c   : > { %v875_v43 = vmul.f32 %v873_v31, %v1412_v46 }
  0x2f   : > { %1121 = vmatmul.mubr.msk.bf16.vlgmr.msra.gmra.mrb[12].mxu0 %vm284_vm2, %v593_v33 }
  0x30   : > { %1127 = vmatmul.mubr.msk.bf16.vlgmr.msra.gmra.mrb[12].mxu1 %vm284_vm2, %v646_v34  ;;  %1131 = vmatpush3.bf16.msra.mxu0 %v706_v35 }
  0x31   : > { %1137 = vmatpush3.bf16.msra.mxu1 %v759_v36  ;;  %1132 = vmatprep.mubr.msk.bf16.mxu0 %vm1233_vm1, %v1232_v2 }
  0x32   : > { %1142 = vmatprep.subr.bf16.mxu0 %v1232_v2  ;;  %1138 = vmatprep.mubr.msk.bf16.mxu1 %vm1233_vm1, %v1232_v2 }
  0x37   : > { %1133 = vmatmul.mubr.msk.bf16.vlgmr.msra.gmra.mrb[16].mxu0 %vm284_vm2, %v699_v40 }
  0x38   : > { %1139 = vmatmul.mubr.msk.bf16.vlgmr.msra.gmra.mrb[16].mxu1 %vm284_vm2, %v752_v41  ;;  %1143 = vmatpush3.bf16.msra.mxu0 %v812_v42 }
  0x39   : > { %1144 = vmatprep.mubr.msk.bf16.mxu0 %vm1233_vm1, %v1232_v2 }
  0x3f   : > { %1145 = vmatmul.mubr.msk.bf16.vlgmr.msra.gmra.mrb[20].mxu0 %vm284_vm2, %v805_v44  ;;  %v874_v44 = vld [vmem:[%s1455_s5] sm:$0x1] }
  0x40   : > { %v876_v47 = vsub.f32 %v874_v44, %v875_v43 }
  0x42   : > { %v888_v46 = vrot.slane %v876_v47, %v880_v45 }
  0xea   : > { %v326_v48 = vpop.f32.mrb[0].mxu0 }
  0xeb   : > { %v372_v49 = vpop.f32.mrb[0].mxu1  ;;  %v1086_v51 = vpop.f32.mrb[1].mxu0 }
  0xec   : > { %v373_v50 = vadd.f32 %v372_v49, %v326_v48  ;;  %v1092_v52 = vpop.f32.mrb[1].mxu1  ;;  %v329_v53 = vpop.f32.mrb[2].mxu0  ;;  %v1056_v49 = vld [vmem:[%s1452_s2] ss:$0 sm:$0xff]  ;;  %v881_v51 = vrot.slane %v873_v31, %v880_v45 }
  0xed   : > { %v375_v54 = vpop.f32.mrb[2].mxu1  ;;  %v1087_v57 = vpop.f32.mrb[3].mxu0 }
  0xee   : > { %v1093_v58 = vpop.f32.mrb[3].mxu1 }
  0xf2   : > { %v424_v60 = vpop.f32.mrb[4].mxu0 }
  0xf3   : > { %v477_v61 = vpop.f32.mrb[4].mxu1  ;;  %v430_v62 = vadd.f32 %v424_v60, %v373_v50  ;;  %v1098_v63 = vpop.f32.mrb[5].mxu0 }
  0xf4   : > { %v1104_v0 = vpop.f32.mrb[5].mxu1  ;;  %v427_v1 = vpop.f32.mrb[6].mxu0 }
  0xf5   : > { %v480_v2 = vpop.f32.mrb[6].mxu1  ;;  %v483_v4 = vadd.f32 %v477_v61, %v430_v62  ;;  %v1099_v5 = vpop.f32.mrb[7].mxu0 }
  0xf6   : > { %v1105_v6 = vpop.f32.mrb[7].mxu1 }
  0xfa   : > { %v530_v8 = vpop.f32.mrb[8].mxu0 }
  0xfb   : > { %v583_v9 = vpop.f32.mrb[8].mxu1  ;;  %v536_v10 = vadd.f32 %v530_v8, %v483_v4  ;;  %v1110_v11 = vpop.f32.mrb[9].mxu0 }
  0xfc   : > { %v1116_v12 = vpop.f32.mrb[9].mxu1  ;;  %v533_v13 = vpop.f32.mrb[10].mxu0 }
  0xfd   : > { %v586_v14 = vpop.f32.mrb[10].mxu1  ;;  %v589_v15 = vadd.f32 %v583_v9, %v536_v10  ;;  %v1111_v16 = vpop.f32.mrb[11].mxu0 }
  0xfe   : > { %v1117_v17 = vpop.f32.mrb[11].mxu1 }
 0x102   : > { %v636_v18 = vpop.f32.mrb[12].mxu0 }
 0x103   : > { %v689_v19 = vpop.f32.mrb[12].mxu1  ;;  %v642_v20 = vadd.f32 %v636_v18, %v589_v15  ;;  %v1122_v21 = vpop.f32.mrb[13].mxu0 }
 0x104   : > { %v1128_v22 = vpop.f32.mrb[13].mxu1  ;;  %v639_v23 = vpop.f32.mrb[14].mxu0 }
 0x105   : > { %v692_v24 = vpop.f32.mrb[14].mxu1  ;;  %v695_v25 = vadd.f32 %v689_v19, %v642_v20  ;;  %v1123_v26 = vpop.f32.mrb[15].mxu0 }
 0x106   : > { %v1129_v27 = vpop.f32.mrb[15].mxu1 }
 0x10a   : > { %v742_v32 = vpop.f32.mrb[16].mxu0 }
 0x10b   : > { %v795_v33 = vpop.f32.mrb[16].mxu1  ;;  %v748_v34 = vadd.f32 %v742_v32, %v695_v25  ;;  %v1134_v35 = vpop.f32.mrb[17].mxu0 }
 0x10c   : > { %v1140_v36 = vpop.f32.mrb[17].mxu1  ;;  %v745_v38 = vpop.f32.mrb[18].mxu0 }
 0x10d   : > { %v798_v39 = vpop.f32.mrb[18].mxu1  ;;  %v801_v40 = vadd.f32 %v795_v33, %v748_v34  ;;  %v1135_v41 = vpop.f32.mrb[19].mxu0 }
 0x10e   : > { %v1141_v42 = vpop.f32.mrb[19].mxu1 }
 0x112   : > { %v848_v48 = vpop.f32.mrb[20].mxu0 }
 0x113   : > { %v854_v50 = vadd.f32 %v848_v48, %v801_v40  ;;  %v1146_v52 = vpop.f32.mrb[21].mxu0 }
 0x114   : > { %v851_v53 = vpop.f32.mrb[22].mxu0 }
 0x115   : > { %v862_v54 = vadd.f32 %v1056_v49, %v854_v50  ;;  %v1147_v55 = vpop.f32.mrb[23].mxu0 }
 0x117   : > { %v883_v56 = vmul.f32 %v881_v51, %v862_v54 }
 0x119   : > { %v890_v57 = vadd.f32 %v888_v46, %v883_v56 }
 0x11b   : > { %v891_v58 = vmax.f32 %v890_v57, 0.0 }
 0x11d   : > { %892 = vst [vmem:[%s271_s22] sm:$0xff] %v891_v58 }
 0x11e PF: > { %s16_s25 = sadd.s32 1, %s1230_s25   ;;  %s1457_s21 = smov %s1222_s23 }
 0x11f   : > { %p13_p7 = scmp.ge.s32.totalorder %s16_s25, 6   ;;  %s1458_s22 = smov %s1226_s24 }
 0x120   : > { %s1459_s23 = smov %s1462_s26  ;;  %s1460_s24 = smov %s1466_s27 }
 0x121   :  { %15 = sbr.rel (!%p13_p7) target bundleno = 3 (0x3), region = 95 }

// kernel: _lambda_.10
= control target key start
LH: loop header
LB: loop body
LE: loop exit
PB: predicated region body
PF: predicated region fallthrough
CT: control target
= control target key end

     0   :  { %s1346_s12 = smov 0   ;;  %s1348_s13 = smov 0   ;;  %s1554_s0 = inlined_call_operand.vmem [shape: f32[2,26,32], index: 0, kind: input, shape index: {}]   ;;  %s1555_s1 = inlined_call_operand.vmem [shape: bf16[11,32,128], index: 1, kind: input, shape index: {}]   ;;  %s1556_s2 = inlined_call_operand.vmem [shape: f32[1,128], index: 2, kind: input, shape index: {}]   ;;  %s1557_s3 = inlined_call_operand.vmem [shape: f32[2,128], index: 3, kind: output, shape index: {}]  }
   0x1   :  { %s1350_s14 = smov 0   ;;  %s1352_s15 = smov 0  }
   0x2   :  { %s1354_s16 = smov 0  }
   0x3 LB: > { %s22_s17 = sadd.s32 1, %s1313_s14  ;;  %s25_s18 = sadd.s32 1, %s1317_s15  ;;  %s1321_s16 = sphi %s1354_s16, %s13_s16   ;;  %s1317_s15 = sphi %s1352_s15, %s1561_s15   ;;  %s1313_s14 = sphi %s1350_s14, %s1560_s14   ;;  %s1309_s13 = sphi %s1348_s13, %s1559_s13   ;;  %s1305_s12 = sphi %s1346_s12, %s1558_s12  }
   0x4   : > { %p23_p0 = scmp.ge.s32.totalorder %s22_s17, 2  ;;  %p996_p1 = scmp.ge.s32.totalorder %s1321_s16, 1 }
   0x5   : > { %p144_p2 = scmp.lt.s32.totalorder %s1321_s16, 5 }
   0x6   : > { %s1563_s17 = smov (%p23_p0, %s22_s17), 0  ;;  %s1565_s18 = smov (!%p23_p0, %s25_s18), %s1317_s15 }
   0x7   : > { %p145_p3 = pnand %p996_p1, %p144_p2  ;;  %p27_p4 = scmp.ge.s32.totalorder %s1565_s18, 2 }
   0x8   : > { %p163_p5 = scmp.lt.s32.totalorder (!%p145_p3), %s1309_s13, 1  ;;  %p169_p6 = scmp.eq.s32.totalorder (!%p145_p3), %s1309_s13, 0 }
   0x9   : > { %s1567_s18 = smov (%p27_p4, %s1565_s18), 0  ;;  %148 = sbr.rel (%p145_p3) target bundleno = 306 (0x132), region = 32 }
   0xa   : > { %p170_p7 = scmp.eq.s32.totalorder (!%p145_p3), %s1305_s12, 0 }
   0xc   : > { %p171_p8 = pnand (!%p145_p3), %p170_p7, %p169_p6 }
  0x10   : > { %s1569_s13 = smov (!%p163_p5, %s1309_s13), 1  ;;  %174 = sbr.rel (%p171_p8) target bundleno = 23 (0x17), region = 36 }
  0x11   : > { %s1096_s19 = sshll.u32 %s1569_s13, 5  ;;  %v1323_v0 = vmov (!%p171_p8), 0.0  }
  0x12   : > { %s167_s22 = scalar_lea.vmem %s1554_s0, %s1096_s19  ;;  %175 = vst [vmem:[%s1557_s3] sm:$0x3] (!%p171_p8), %v1323_v0 }
  0x17 PF: > { %v1261_v1 = vld [vmem:[%s1555_s1 + $0x10] sm:$0xff]   ;;  %v1324_v2 = vmov 0.0   ;;  %v1262_v3 = vld [vmem:[%s1555_s1] sm:$0xff]   ;;  %v1263_v4 = vld [vmem:[%s1555_s1 + $0x18] sm:$0xff]   ;;  %vm1325_vm0 = vmmov 0   ;;  %s999_s4 = sshll.u32 %s1305_s12, 3 }
  0x18   : > { %1130 = vmatprep.subr.bf16.mxu0 %v1324_v2  ;;  %1138 = vmatprep.subr.bf16.mxu1 %v1324_v2  ;;  %v1264_v5 = vld [vmem:[%s1555_s1 + $0x8] sm:$0xff]   ;;  %s1405_s7 = scalar_lea.vmem %s167_s22, %s999_s4  ;;  %vm205_vm1 = vcmask 261120   ;;  %v1265_v10 = vld [vmem:[%s1555_s1 + $0x20] sm:$0xff]   ;;  %v1266_v11 = vld [vmem:[%s1555_s1 + $0x30] sm:$0xff]  }
  0x19   : > { %1131 = vmatpush3.bf16.msra.mxu0 %v1261_v1  ;;  %1134 = vmatprep.mubr.msk.bf16.mxu0 %vm1325_vm0, %v1324_v2  ;;  %v1001_v6 = vld [vmem:[%s1405_s7 + $0x1] sm:$0xff]  ;;  %v1268_v13 = vld [vmem:[%s1555_s1 + $0x38] sm:$0xff]   ;;  %v1270_v19 = vld [vmem:[%s1555_s1 + $0x50] sm:$0xff]  }
  0x1a   : > { %1139 = vmatpush3.bf16.msra.mxu1 %v1262_v3  ;;  %1132 = vmatprep.subr.bf16.mxu0 %v1324_v2  ;;  %v178_v7 = vld [vmem:[%s1405_s7] sm:$0xff]  ;;  %v187_v8 = vpack.c.bf16 %v1001_v6, %v1001_v6  ;;  %v1267_v12 = vld [vmem:[%s1555_s1 + $0x28] sm:$0xff]   ;;  %v1272_v22 = vld [vmem:[%s1555_s1 + $0x58] sm:$0xff]  }
  0x1b   : > { %1140 = vmatprep.subr.bf16.mxu1 %v1324_v2  ;;  %1142 = vmatprep.mubr.msk.bf16.mxu1 %vm1325_vm0, %v1324_v2  ;;  %v179_v9 = vpack.c.bf16 %v178_v7, %v178_v7  ;;  %v1013_v14 = vld [vmem:[%s1405_s7 + $0x2] sm:$0xff]  ;;  %v1274_v27 = vld [vmem:[%s1555_s1 + $0x70] sm:$0xff]   ;;  %v1276_v30 = vld [vmem:[%s1555_s1 + $0x78] sm:$0xff]  }
  0x1c   : > { %v1022_v15 = vld [vmem:[%s1405_s7 + $0x3] sm:$0xff]  ;;  %v307_v16 = vpack.c.bf16 %v1013_v14, %v1013_v14  ;;  %v1278_v35 = vld [vmem:[%s1555_s1 + $0x90] sm:$0xff]   ;;  %v1280_v38 = vld [vmem:[%s1555_s1 + $0x98] sm:$0xff]  }
  0x1d   : > { %1133 = vmatpush3.bf16.msra.mxu0 %v1263_v4  ;;  %v1269_v17 = vld [vmem:[%s1555_s1 + $0x40] sm:$0xff]   ;;  %v372_v18 = vpack.c.bf16 %v1022_v15, %v1022_v15  ;;  %v1271_v20 = vld [vmem:[%s1555_s1 + $0x48] sm:$0xff]  }
  0x1e   : > { %1141 = vmatpush3.bf16.msra.mxu1 %v1264_v5  ;;  %1146 = vmatprep.subr.bf16.mxu0 %v1324_v2  ;;  %v1031_v21 = vld [vmem:[%s1405_s7 + $0x4] sm:$0xff] }
  0x1f   : > { %1154 = vmatprep.subr.bf16.mxu1 %v1324_v2  ;;  %v1040_v23 = vld [vmem:[%s1405_s7 + $0x5] sm:$0xff]  ;;  %v437_v24 = vpack.c.bf16 %v1031_v21, %v1031_v21  ;;  %v897_v21 = vlaneseq }
  0x20   : > { %1135 = vmatmul.mubr.msk.bf16.vlgmr.msra.gmra.mrb[0].mxu0 %vm205_vm1, %v187_v8  ;;  %v1273_v25 = vld [vmem:[%s1555_s1 + $0x60] sm:$0xff]   ;;  %v502_v26 = vpack.c.bf16 %v1040_v23, %v1040_v23  ;;  %v1275_v28 = vld [vmem:[%s1555_s1 + $0x68] sm:$0xff]  }
  0x21   : > { %1143 = vmatmul.mubr.msk.bf16.vlgmr.msra.gmra.mrb[0].mxu1 %vm205_vm1, %v179_v9  ;;  %1147 = vmatpush3.bf16.msra.mxu0 %v1265_v10  ;;  %v1049_v29 = vld [vmem:[%s1405_s7 + $0x6] sm:$0xff] }
  0x22   : > { %1155 = vmatpush3.bf16.msra.mxu1 %v1266_v11  ;;  %1148 = vmatprep.subr.bf16.mxu0 %v1324_v2  ;;  %v1058_v31 = vld [vmem:[%s1405_s7 + $0x7] sm:$0xff]  ;;  %v567_v32 = vpack.c.bf16 %v1049_v29, %v1049_v29 }
  0x23   : > { %1156 = vmatprep.subr.bf16.mxu1 %v1324_v2  ;;  %1150 = vmatprep.mubr.msk.bf16.mxu0 %vm1325_vm0, %v1324_v2  ;;  %v1277_v33 = vld [vmem:[%s1555_s1 + $0x80] sm:$0xff]   ;;  %v632_v34 = vpack.c.bf16 %v1058_v31, %v1058_v31  ;;  %v1279_v36 = vld [vmem:[%s1555_s1 + $0x88] sm:$0xff]  }
  0x24   : > { %1158 = vmatprep.mubr.msk.bf16.mxu1 %vm1325_vm0, %v1324_v2  ;;  %v1067_v37 = vld [vmem:[%s1405_s7 + $0x8] sm:$0xff]  ;;  %v1281_v41 = vld [vmem:[%s1555_s1 + $0xa0] sm:$0xff]  }
  0x25   : > { %1149 = vmatpush3.bf16.msra.mxu0 %v1267_v12  ;;  %v1076_v39 = vld [vmem:[%s1405_s7 + $0x9] sm:$0xff]  ;;  %v697_v40 = vpack.c.bf16 %v1067_v37, %v1067_v37 }
  0x26   : > { %1157 = vmatpush3.bf16.msra.mxu1 %v1268_v13  ;;  %1162 = vmatprep.subr.bf16.mxu0 %v1324_v2  ;;  %v762_v42 = vpack.c.bf16 %v1076_v39, %v1076_v39  ;;  %v1282_v43 = vld [vmem:[%s1555_s1 + $0xa8] sm:$0xff]  }
  0x27   : > { %1170 = vmatprep.subr.bf16.mxu1 %v1324_v2  ;;  %v1085_v44 = vld [vmem:[%s1405_s7 + $0xa] sm:$0xff] }
  0x28   : > { %1151 = vmatmul.mubr.msk.bf16.vlgmr.msra.gmra.mrb[4].mxu0 %vm205_vm1, %v307_v16  ;;  %v827_v45 = vpack.c.bf16 %v1085_v44, %v1085_v44 }
  0x29   : > { %1163 = vmatpush3.bf16.msra.mxu0 %v1269_v17  ;;  %1159 = vmatmul.mubr.msk.bf16.vlgmr.msra.gmra.mrb[4].mxu1 %vm205_vm1, %v372_v18 }
  0x2a   : > { %1171 = vmatpush3.bf16.msra.mxu1 %v1270_v19  ;;  %1164 = vmatprep.subr.bf16.mxu0 %v1324_v2 }
  0x2b   : > { %1172 = vmatprep.subr.bf16.mxu1 %v1324_v2  ;;  %1166 = vmatprep.mubr.msk.bf16.mxu0 %vm1325_vm0, %v1324_v2 }
  0x2c   : > { %1174 = vmatprep.mubr.msk.bf16.mxu1 %vm1325_vm0, %v1324_v2 }
  0x2d   : > { %1165 = vmatpush3.bf16.msra.mxu0 %v1271_v20 }
  0x2e   : > { %1173 = vmatpush3.bf16.msra.mxu1 %v1272_v22  ;;  %1178 = vmatprep.subr.bf16.mxu0 %v1324_v2 }
  0x2f   : > { %1186 = vmatprep.subr.bf16.mxu1 %v1324_v2 }
  0x30   : > { %1167 = vmatmul.mubr.msk.bf16.vlgmr.msra.gmra.mrb[8].mxu0 %vm205_vm1, %v437_v24 }
  0x31   : > { %1179 = vmatpush3.bf16.msra.mxu0 %v1273_v25  ;;  %1175 = vmatmul.mubr.msk.bf16.vlgmr.msra.gmra.mrb[8].mxu1 %vm205_vm1, %v502_v26 }
  0x32   : > { %1187 = vmatpush3.bf16.msra.mxu1 %v1274_v27  ;;  %1180 = vmatprep.subr.bf16.mxu0 %v1324_v2 }
  0x33   : > { %1188 = vmatprep.subr.bf16.mxu1 %v1324_v2  ;;  %1182 = vmatprep.mubr.msk.bf16.mxu0 %vm1325_vm0, %v1324_v2 }
  0x34   : > { %1190 = vmatprep.mubr.msk.bf16.mxu1 %vm1325_vm0, %v1324_v2 }
  0x35   : > { %1181 = vmatpush3.bf16.msra.mxu0 %v1275_v28  ;;  %v898_v28 = vshrl.u32 %v897_v21, 7 }
  0x36   : > { %1189 = vmatpush3.bf16.msra.mxu1 %v1276_v30  ;;  %1194 = vmatprep.subr.bf16.mxu0 %v1324_v2 }
  0x37   : > { %1202 = vmatprep.subr.bf16.mxu1 %v1324_v2 }
  0x38   : > { %1183 = vmatmul.mubr.msk.bf16.vlgmr.msra.gmra.mrb[12].mxu0 %vm205_vm1, %v567_v32  ;;  %v899_v32 = vstv %s999_s4 }
  0x39   : > { %1195 = vmatpush3.bf16.msra.mxu0 %v1277_v33  ;;  %1191 = vmatmul.mubr.msk.bf16.vlgmr.msra.gmra.mrb[12].mxu1 %vm205_vm1, %v632_v34  ;;  %v900_v34 = vadd.s32 %v899_v32, %v898_v28 }
  0x3a   : > { %1203 = vmatpush3.bf16.msra.mxu1 %v1278_v35  ;;  %1196 = vmatprep.subr.bf16.mxu0 %v1324_v2 }
  0x3b   : > { %1204 = vmatprep.subr.bf16.mxu1 %v1324_v2  ;;  %1198 = vmatprep.mubr.msk.bf16.mxu0 %vm1325_vm0, %v1324_v2  ;;  %vm901_vm2 = vcmp.lt.s32.totalorder %v900_v34, 16 }
  0x3c   : > { %1206 = vmatprep.mubr.msk.bf16.mxu1 %vm1325_vm0, %v1324_v2 }
  0x3d   : > { %1197 = vmatpush3.bf16.msra.mxu0 %v1279_v36  ;;  %v1093_v36 = vld [vmem:[%s1556_s2] ss:$0 sm:$0xff] }
  0x3e   : > { %1205 = vmatpush3.bf16.msra.mxu1 %v1280_v38  ;;  %1210 = vmatprep.subr.bf16.mxu0 %v1324_v2 }
  0x40   : > { %1199 = vmatmul.mubr.msk.bf16.vlgmr.msra.gmra.mrb[16].mxu0 %vm205_vm1, %v697_v40 }
  0x41   : > { %1211 = vmatpush3.bf16.msra.mxu0 %v1281_v41  ;;  %1207 = vmatmul.mubr.msk.bf16.vlgmr.msra.gmra.mrb[16].mxu1 %vm205_vm1, %v762_v42 }
  0x42   : > { %1212 = vmatprep.subr.bf16.mxu0 %v1324_v2  ;;  %1214 = vmatprep.mubr.msk.bf16.mxu0 %vm1325_vm0, %v1324_v2 }
  0x45   : > { %1213 = vmatpush3.bf16.msra.mxu0 %v1282_v43 }
  0x48   : > { %1215 = vmatmul.mubr.msk.bf16.vlgmr.msra.gmra.mrb[20].mxu0 %vm205_vm1, %v827_v45 }
  0xf3   : > { %v243_v46 = vpop.f32.mrb[0].mxu0 }
  0xf4   : > { %v1136_v47 = vpop.f32.mrb[1].mxu0  ;;  %v298_v48 = vpop.f32.mrb[0].mxu1 }
  0xf5   : > { %v299_v49 = vadd.f32 %v298_v48, %v243_v46  ;;  %v246_v50 = vpop.f32.mrb[2].mxu0  ;;  %v1144_v51 = vpop.f32.mrb[1].mxu1 }
  0xf6   : > { %v1137_v52 = vpop.f32.mrb[3].mxu0  ;;  %v301_v53 = vpop.f32.mrb[2].mxu1 }
  0xf7   : > { %v1145_v54 = vpop.f32.mrb[3].mxu1  ;;  %v903_v53 = vld [vmem:[%s1557_s3] sm:$0x1] }
  0xfb   : > { %v362_v55 = vpop.f32.mrb[4].mxu0 }
  0xfc   : > { %v368_v56 = vadd.f32 %v362_v55, %v299_v49  ;;  %v1152_v57 = vpop.f32.mrb[5].mxu0  ;;  %v427_v58 = vpop.f32.mrb[4].mxu1 }
  0xfd   : > { %v365_v59 = vpop.f32.mrb[6].mxu0  ;;  %v1160_v60 = vpop.f32.mrb[5].mxu1 }
  0xfe   : > { %v433_v61 = vadd.f32 %v427_v58, %v368_v56  ;;  %v1153_v62 = vpop.f32.mrb[7].mxu0  ;;  %v430_v63 = vpop.f32.mrb[6].mxu1  ;;  %v912_v56 = vld [vmem:[%s1557_s3 + $0x1] sm:$0x1] }
  0xff   : > { %v1161_v0 = vpop.f32.mrb[7].mxu1 }
 0x103   : > { %v492_v1 = vpop.f32.mrb[8].mxu0 }
 0x104   : > { %v498_v2 = vadd.f32 %v492_v1, %v433_v61  ;;  %v1168_v3 = vpop.f32.mrb[9].mxu0  ;;  %v557_v4 = vpop.f32.mrb[8].mxu1 }
 0x105   : > { %v495_v5 = vpop.f32.mrb[10].mxu0  ;;  %v1176_v6 = vpop.f32.mrb[9].mxu1 }
 0x106   : > { %v563_v7 = vadd.f32 %v557_v4, %v498_v2  ;;  %v1169_v8 = vpop.f32.mrb[11].mxu0  ;;  %v560_v9 = vpop.f32.mrb[10].mxu1 }
 0x107   : > { %v1177_v10 = vpop.f32.mrb[11].mxu1 }
 0x10b   : > { %v622_v11 = vpop.f32.mrb[12].mxu0 }
 0x10c   : > { %v628_v12 = vadd.f32 %v622_v11, %v563_v7  ;;  %v1184_v13 = vpop.f32.mrb[13].mxu0  ;;  %v687_v14 = vpop.f32.mrb[12].mxu1 }
 0x10d   : > { %v625_v15 = vpop.f32.mrb[14].mxu0  ;;  %v1192_v16 = vpop.f32.mrb[13].mxu1 }
 0x10e   : > { %v693_v17 = vadd.f32 %v687_v14, %v628_v12  ;;  %v1185_v18 = vpop.f32.mrb[15].mxu0  ;;  %v690_v19 = vpop.f32.mrb[14].mxu1 }
 0x10f   : > { %v1193_v20 = vpop.f32.mrb[15].mxu1 }
 0x113   : > { %v752_v22 = vpop.f32.mrb[16].mxu0 }
 0x114   : > { %v758_v23 = vadd.f32 %v752_v22, %v693_v17  ;;  %v1200_v24 = vpop.f32.mrb[17].mxu0  ;;  %v817_v25 = vpop.f32.mrb[16].mxu1 }
 0x115   : > { %v755_v26 = vpop.f32.mrb[18].mxu0  ;;  %v1208_v27 = vpop.f32.mrb[17].mxu1 }
 0x116   : > { %v823_v29 = vadd.f32 %v817_v25, %v758_v23  ;;  %v1201_v30 = vpop.f32.mrb[19].mxu0  ;;  %v820_v31 = vpop.f32.mrb[18].mxu1 }
 0x117   : > { %v1209_v33 = vpop.f32.mrb[19].mxu1 }
 0x11b   : > { %v882_v35 = vpop.f32.mrb[20].mxu0 }
 0x11c   : > { %v888_v37 = vadd.f32 %v882_v35, %v823_v29  ;;  %v1216_v38 = vpop.f32.mrb[21].mxu0 }
 0x11d   : > { %v885_v39 = vpop.f32.mrb[22].mxu0 }
 0x11e   : > { %v896_v40 = vadd.f32 %v1093_v36, %v888_v37  ;;  %v1217_v41 = vpop.f32.mrb[23].mxu0 }
 0x120   : > { %v902_v42 = vsel %vm901_vm2, %v896_v40, 0.0 }
 0x121   : > { %v904_v43 = vrot.slane %v902_v42, 4  ;;  %v913_v44 = vmul.f32 %v902_v42, %v902_v42 }
 0x123   : > { %v905_v45 = vadd.f32 %v904_v43, %v902_v42  ;;  %v914_v46 = vrot.slane %v913_v44, 4 }
 0x125   : > { %v906_v47 = vrot.slane %v905_v45, 2  ;;  %v915_v48 = vadd.f32 %v914_v46, %v913_v44 }
 0x127   : > { %v907_v49 = vadd.f32 %v906_v47, %v905_v45  ;;  %v916_v50 = vrot.slane %v915_v48, 2 }
 0x129   : > { %v908_v51 = vrot.slane %v907_v49, 1  ;;  %v917_v52 = vadd.f32 %v916_v50, %v915_v48 }
 0x12b   : > { %v909_v54 = vadd.f32 %v908_v51, %v907_v49  ;;  %v918_v55 = vrot.slane %v917_v52, 1 }
 0x12d   : > { %v910_v57 = vadd.f32 %v909_v54, %v903_v53  ;;  %v919_v58 = vadd.f32 %v918_v55, %v917_v52 }
 0x12f   : > { %911 = vst [vmem:[%s1557_s3] sm:$0x1] %v910_v57  ;;  %v920_v59 = vadd.f32 %v919_v58, %v912_v56 }
 0x131   : > { %921 = vst [vmem:[%s1557_s3 + $0x1] sm:$0x1] %v920_v59 }
 0x132 PF: > { %s13_s16 = sadd.s32 1, %s1321_s16   ;;  %s1558_s12 = smov %s1313_s14 }
 0x133   : > { %p10_p9 = scmp.ge.s32.totalorder %s13_s16, 6   ;;  %s1559_s13 = smov %s1317_s15 }
 0x134   : > { %s1560_s14 = smov %s1563_s17  ;;  %s1561_s15 = smov %s1567_s18 }
 0x135   :  { %12 = sbr.rel (!%p10_p9) target bundleno = 3 (0x3), region = 83 }

// kernel: _lambda_.8
= control target key start
LH: loop header
LB: loop body
LE: loop exit
PB: predicated region body
PF: predicated region fallthrough
CT: control target
= control target key end

     0   :  { %s1108_s12 = smov 0   ;;  %s1110_s13 = smov 0   ;;  %s1283_s0 = inlined_call_operand.vmem [shape: f32[2,26,4], index: 0, kind: input, shape index: {}]   ;;  %s1284_s1 = inlined_call_operand.vmem [shape: bf16[11,4,128], index: 1, kind: input, shape index: {}]   ;;  %s1285_s2 = inlined_call_operand.vmem [shape: f32[1,128], index: 2, kind: input, shape index: {}]   ;;  %s1286_s3 = inlined_call_operand.vmem [shape: f32[2,128], index: 3, kind: output, shape index: {}]  }
   0x1   :  { %s1112_s14 = smov 0   ;;  %s1114_s15 = smov 0  }
   0x2   :  { %s1116_s16 = smov 0  }
   0x3 LB: > { %s22_s17 = sadd.s32 1, %s1075_s14  ;;  %s25_s18 = sadd.s32 1, %s1079_s15  ;;  %s1083_s16 = sphi %s1116_s16, %s13_s16   ;;  %s1079_s15 = sphi %s1114_s15, %s1290_s15   ;;  %s1075_s14 = sphi %s1112_s14, %s1289_s14   ;;  %s1071_s13 = sphi %s1110_s13, %s1288_s13   ;;  %s1067_s12 = sphi %s1108_s12, %s1287_s12  }
   0x4   : > { %p23_p0 = scmp.ge.s32.totalorder %s22_s17, 2  ;;  %p865_p1 = scmp.ge.s32.totalorder %s1083_s16, 1 }
   0x5   : > { %p144_p2 = scmp.lt.s32.totalorder %s1083_s16, 5 }
   0x6   : > { %s1292_s17 = smov (%p23_p0, %s22_s17), 0  ;;  %s1294_s18 = smov (!%p23_p0, %s25_s18), %s1079_s15 }
   0x7   : > { %p145_p3 = pnand %p865_p1, %p144_p2  ;;  %p27_p4 = scmp.ge.s32.totalorder %s1294_s18, 2 }
   0x8   : > { %p163_p5 = scmp.lt.s32.totalorder (!%p145_p3), %s1071_s13, 1  ;;  %p169_p6 = scmp.eq.s32.totalorder (!%p145_p3), %s1071_s13, 0 }
   0x9   : > { %s1296_s18 = smov (%p27_p4, %s1294_s18), 0  ;;  %148 = sbr.rel (%p145_p3) target bundleno = 303 (0x12f), region = 32 }
   0xa   : > { %p170_p7 = scmp.eq.s32.totalorder (!%p145_p3), %s1067_s12, 0 }
   0xc   : > { %p171_p8 = pnand (!%p145_p3), %p170_p7, %p169_p6 }
  0x10   : > { %s1298_s13 = smov (!%p163_p5, %s1071_s13), 1  ;;  %174 = sbr.rel (%p171_p8) target bundleno = 23 (0x17), region = 36 }
  0x11   : > { %s913_s19 = sshll.u32 %s1298_s13, 5  ;;  %v1085_v0 = vmov (!%p171_p8), 0.0  }
  0x12   : > { %s167_s22 = scalar_lea.vmem %s1283_s0, %s913_s19  ;;  %175 = vst [vmem:[%s1286_s3] sm:$0x3] (!%p171_p8), %v1085_v0 }
  0x17 PF: > { %v871_v1 = vld [vmem:[%s1284_s1 + $0x2] sm:$0x3]  ;;  %vm191_vm0 = vcmask 1041408   ;;  %v180_v2 = vld [vmem:[%s1284_s1] sm:$0x3]  ;;  %v1086_v3 = vmov 0.0  }
  0x18   : > { %936 = vmatprep.subr.bf16.mxu0 %v1086_v3  ;;  %v193_v4 = vsel %vm191_vm0, %v871_v1, 0  ;;  %942 = vmatprep.subr.bf16.mxu1 %v1086_v3  ;;  %v239_v5 = vsel %vm191_vm0, %v180_v2, 0  ;;  %s868_s29 = sshll.u32 %s1067_s12, 3  ;;  %v876_v6 = vld [vmem:[%s1284_s1 + $0x4] sm:$0x3]  ;;  %vm1087_vm1 = vmmov 0  }
  0x19   : > { %937 = vmatpush3.bf16.msra.mxu0 %v193_v4  ;;  %943 = vmatpush3.bf16.msra.mxu1 %v239_v5  ;;  %s1160_s30 = scalar_lea.vmem %s167_s22, %s868_s29  ;;  %v880_v7 = vld [vmem:[%s1284_s1 + $0x6] sm:$0x3]  ;;  %vm187_vm2 = vcmask 31744   ;;  %v291_v12 = vsel %vm191_vm0, %v876_v6, 0  ;;  %v884_v16 = vld [vmem:[%s1284_s1 + $0x8] sm:$0x3] }
  0x1a   : > { %938 = vmatprep.mubr.msk.bf16.mxu0 %vm1087_vm1, %v1086_v3  ;;  %v870_v8 = vld [vmem:[%s1160_s30 + $0x1] sm:$0xff]  ;;  %944 = vmatprep.mubr.msk.bf16.mxu1 %vm1087_vm1, %v1086_v3  ;;  %v344_v13 = vsel %vm191_vm0, %v880_v7, 0  ;;  %v888_v19 = vld [vmem:[%s1284_s1 + $0xa] sm:$0x3]  ;;  %v397_v20 = vsel %vm191_vm0, %v884_v16, 0 }
  0x1b   : > { %v178_v9 = vld [vmem:[%s1160_s30] sm:$0xff]  ;;  %v184_v10 = vpack.c.bf16 %v870_v8, %v870_v8  ;;  %948 = vmatprep.subr.bf16.mxu0 %v1086_v3  ;;  %954 = vmatprep.subr.bf16.mxu1 %v1086_v3  ;;  %v450_v21 = vsel %vm191_vm0, %v888_v19, 0  ;;  %v892_v24 = vld [vmem:[%s1284_s1 + $0xc] sm:$0x3]  ;;  %v896_v27 = vld [vmem:[%s1284_s1 + $0xe] sm:$0x3] }
  0x1c   : > { %v179_v11 = vpack.c.bf16 %v178_v9, %v178_v9  ;;  %v875_v14 = vld [vmem:[%s1160_s30 + $0x2] sm:$0xff]  ;;  %v503_v28 = vsel %vm191_vm0, %v892_v24, 0  ;;  %v556_v29 = vsel %vm191_vm0, %v896_v27, 0  ;;  %v900_v32 = vld [vmem:[%s1284_s1 + $0x10] sm:$0x3] }
  0x1d   : > { %939 = vmatmul.mubr.msk.bf16.vlgmr.msra.gmra.mrb[0].mxu0 %vm187_vm2, %v184_v10  ;;  %v879_v15 = vld [vmem:[%s1160_s30 + $0x3] sm:$0xff]  ;;  %v284_v17 = vpack.c.bf16 %v875_v14, %v875_v14  ;;  %v904_v35 = vld [vmem:[%s1284_s1 + $0x12] sm:$0x3]  ;;  %v609_v36 = vsel %vm191_vm0, %v900_v32, 0  ;;  %v908_v40 = vld [vmem:[%s1284_s1 + $0x14] sm:$0x3] }
  0x1e   : > { %945 = vmatmul.mubr.msk.bf16.vlgmr.msra.gmra.mrb[0].mxu1 %vm187_vm2, %v179_v11  ;;  %949 = vmatpush3.bf16.msra.mxu0 %v291_v12  ;;  %v337_v18 = vpack.c.bf16 %v879_v15, %v879_v15  ;;  %v883_v22 = vld [vmem:[%s1160_s30 + $0x4] sm:$0xff]  ;;  %v662_v37 = vsel %vm191_vm0, %v904_v35, 0  ;;  %v715_v43 = vsel %vm191_vm0, %v908_v40, 0 }
  0x1f   : > { %950 = vmatprep.mubr.msk.bf16.mxu0 %vm1087_vm1, %v1086_v3  ;;  %955 = vmatpush3.bf16.msra.mxu1 %v344_v13  ;;  %v887_v23 = vld [vmem:[%s1160_s30 + $0x5] sm:$0xff]  ;;  %v390_v25 = vpack.c.bf16 %v883_v22, %v883_v22 }
  0x20   : > { %960 = vmatprep.subr.bf16.mxu0 %v1086_v3  ;;  %956 = vmatprep.mubr.msk.bf16.mxu1 %vm1087_vm1, %v1086_v3  ;;  %v443_v26 = vpack.c.bf16 %v887_v23, %v887_v23  ;;  %v891_v30 = vld [vmem:[%s1160_s30 + $0x6] sm:$0xff] }
  0x21   : > { %966 = vmatprep.subr.bf16.mxu1 %v1086_v3  ;;  %v895_v31 = vld [vmem:[%s1160_s30 + $0x7] sm:$0xff]  ;;  %v496_v33 = vpack.c.bf16 %v891_v30, %v891_v30 }
  0x22   : > { %v549_v34 = vpack.c.bf16 %v895_v31, %v895_v31  ;;  %v899_v38 = vld [vmem:[%s1160_s30 + $0x8] sm:$0xff] }
  0x23   : > { %v903_v39 = vld [vmem:[%s1160_s30 + $0x9] sm:$0xff]  ;;  %v602_v41 = vpack.c.bf16 %v899_v38, %v899_v38 }
  0x24   : > { %v655_v42 = vpack.c.bf16 %v903_v39, %v903_v39  ;;  %v907_v44 = vld [vmem:[%s1160_s30 + $0xa] sm:$0xff] }
  0x25   : > { %951 = vmatmul.mubr.msk.bf16.vlgmr.msra.gmra.mrb[4].mxu0 %vm187_vm2, %v284_v17  ;;  %v708_v45 = vpack.c.bf16 %v907_v44, %v907_v44 }
  0x26   : > { %957 = vmatmul.mubr.msk.bf16.vlgmr.msra.gmra.mrb[4].mxu1 %vm187_vm2, %v337_v18  ;;  %961 = vmatpush3.bf16.msra.mxu0 %v397_v20 }
  0x27   : > { %962 = vmatprep.mubr.msk.bf16.mxu0 %vm1087_vm1, %v1086_v3  ;;  %967 = vmatpush3.bf16.msra.mxu1 %v450_v21  ;;  %v766_v21 = vlaneseq }
  0x28   : > { %972 = vmatprep.subr.bf16.mxu0 %v1086_v3  ;;  %968 = vmatprep.mubr.msk.bf16.mxu1 %vm1087_vm1, %v1086_v3 }
  0x29   : > { %978 = vmatprep.subr.bf16.mxu1 %v1086_v3 }
  0x2d   : > { %963 = vmatmul.mubr.msk.bf16.vlgmr.msra.gmra.mrb[8].mxu0 %vm187_vm2, %v390_v25 }
  0x2e   : > { %969 = vmatmul.mubr.msk.bf16.vlgmr.msra.gmra.mrb[8].mxu1 %vm187_vm2, %v443_v26  ;;  %973 = vmatpush3.bf16.msra.mxu0 %v503_v28 }
  0x2f   : > { %974 = vmatprep.mubr.msk.bf16.mxu0 %vm1087_vm1, %v1086_v3  ;;  %979 = vmatpush3.bf16.msra.mxu1 %v556_v29  ;;  %v767_v29 = vshrl.u32 %v766_v21, 7 }
  0x30   : > { %984 = vmatprep.subr.bf16.mxu0 %v1086_v3  ;;  %980 = vmatprep.mubr.msk.bf16.mxu1 %vm1087_vm1, %v1086_v3 }
  0x31   : > { %990 = vmatprep.subr.bf16.mxu1 %v1086_v3 }
  0x35   : > { %975 = vmatmul.mubr.msk.bf16.vlgmr.msra.gmra.mrb[12].mxu0 %vm187_vm2, %v496_v33  ;;  %v768_v33 = vstv %s868_s29 }
  0x36   : > { %981 = vmatmul.mubr.msk.bf16.vlgmr.msra.gmra.mrb[12].mxu1 %vm187_vm2, %v549_v34  ;;  %985 = vmatpush3.bf16.msra.mxu0 %v609_v36  ;;  %v769_v34 = vadd.s32 %v768_v33, %v767_v29  ;;  %v910_v36 = vld [vmem:[%s1285_s2] ss:$0 sm:$0xff] }
  0x37   : > { %986 = vmatprep.mubr.msk.bf16.mxu0 %vm1087_vm1, %v1086_v3  ;;  %991 = vmatpush3.bf16.msra.mxu1 %v662_v37 }
  0x38   : > { %996 = vmatprep.subr.bf16.mxu0 %v1086_v3  ;;  %992 = vmatprep.mubr.msk.bf16.mxu1 %vm1087_vm1, %v1086_v3  ;;  %vm770_vm3 = vcmp.lt.s32.totalorder %v769_v34, 16 }
  0x3d   : > { %987 = vmatmul.mubr.msk.bf16.vlgmr.msra.gmra.mrb[16].mxu0 %vm187_vm2, %v602_v41 }
  0x3e   : > { %993 = vmatmul.mubr.msk.bf16.vlgmr.msra.gmra.mrb[16].mxu1 %vm187_vm2, %v655_v42  ;;  %997 = vmatpush3.bf16.msra.mxu0 %v715_v43 }
  0x3f   : > { %998 = vmatprep.mubr.msk.bf16.mxu0 %vm1087_vm1, %v1086_v3 }
  0x45   : > { %999 = vmatmul.mubr.msk.bf16.vlgmr.msra.gmra.mrb[20].mxu0 %vm187_vm2, %v708_v45 }
  0xf0   : > { %v229_v46 = vpop.f32.mrb[0].mxu0 }
  0xf1   : > { %v275_v47 = vpop.f32.mrb[0].mxu1  ;;  %v940_v48 = vpop.f32.mrb[1].mxu0 }
  0xf2   : > { %v276_v49 = vadd.f32 %v275_v47, %v229_v46  ;;  %v946_v50 = vpop.f32.mrb[1].mxu1  ;;  %v232_v51 = vpop.f32.mrb[2].mxu0 }
  0xf3   : > { %v278_v52 = vpop.f32.mrb[2].mxu1  ;;  %v941_v53 = vpop.f32.mrb[3].mxu0 }
  0xf4   : > { %v947_v54 = vpop.f32.mrb[3].mxu1  ;;  %v772_v53 = vld [vmem:[%s1286_s3] sm:$0x1] }
  0xf8   : > { %v327_v55 = vpop.f32.mrb[4].mxu0 }
  0xf9   : > { %v380_v56 = vpop.f32.mrb[4].mxu1  ;;  %v333_v57 = vadd.f32 %v327_v55, %v276_v49  ;;  %v952_v58 = vpop.f32.mrb[5].mxu0 }
  0xfa   : > { %v958_v59 = vpop.f32.mrb[5].mxu1  ;;  %v330_v60 = vpop.f32.mrb[6].mxu0 }
  0xfb   : > { %v383_v61 = vpop.f32.mrb[6].mxu1  ;;  %v386_v62 = vadd.f32 %v380_v56, %v333_v57  ;;  %v953_v63 = vpop.f32.mrb[7].mxu0  ;;  %v781_v56 = vld [vmem:[%s1286_s3 + $0x1] sm:$0x1] }
  0xfc   : > { %v959_v0 = vpop.f32.mrb[7].mxu1 }
 0x100   : > { %v433_v1 = vpop.f32.mrb[8].mxu0 }
 0x101   : > { %v486_v2 = vpop.f32.mrb[8].mxu1  ;;  %v439_v3 = vadd.f32 %v433_v1, %v386_v62  ;;  %v964_v4 = vpop.f32.mrb[9].mxu0 }
 0x102   : > { %v970_v5 = vpop.f32.mrb[9].mxu1  ;;  %v436_v6 = vpop.f32.mrb[10].mxu0 }
 0x103   : > { %v489_v7 = vpop.f32.mrb[10].mxu1  ;;  %v492_v8 = vadd.f32 %v486_v2, %v439_v3  ;;  %v965_v9 = vpop.f32.mrb[11].mxu0 }
 0x104   : > { %v971_v10 = vpop.f32.mrb[11].mxu1 }
 0x108   : > { %v539_v11 = vpop.f32.mrb[12].mxu0 }
 0x109   : > { %v592_v12 = vpop.f32.mrb[12].mxu1  ;;  %v545_v13 = vadd.f32 %v539_v11, %v492_v8  ;;  %v976_v14 = vpop.f32.mrb[13].mxu0 }
 0x10a   : > { %v982_v15 = vpop.f32.mrb[13].mxu1  ;;  %v542_v16 = vpop.f32.mrb[14].mxu0 }
 0x10b   : > { %v595_v17 = vpop.f32.mrb[14].mxu1  ;;  %v598_v18 = vadd.f32 %v592_v12, %v545_v13  ;;  %v977_v19 = vpop.f32.mrb[15].mxu0 }
 0x10c   : > { %v983_v20 = vpop.f32.mrb[15].mxu1 }
 0x110   : > { %v645_v22 = vpop.f32.mrb[16].mxu0 }
 0x111   : > { %v698_v23 = vpop.f32.mrb[16].mxu1  ;;  %v651_v24 = vadd.f32 %v645_v22, %v598_v18  ;;  %v988_v25 = vpop.f32.mrb[17].mxu0 }
 0x112   : > { %v994_v26 = vpop.f32.mrb[17].mxu1  ;;  %v648_v27 = vpop.f32.mrb[18].mxu0 }
 0x113   : > { %v701_v28 = vpop.f32.mrb[18].mxu1  ;;  %v704_v30 = vadd.f32 %v698_v23, %v651_v24  ;;  %v989_v31 = vpop.f32.mrb[19].mxu0 }
 0x114   : > { %v995_v32 = vpop.f32.mrb[19].mxu1 }
 0x118   : > { %v751_v35 = vpop.f32.mrb[20].mxu0 }
 0x119   : > { %v757_v37 = vadd.f32 %v751_v35, %v704_v30  ;;  %v1000_v38 = vpop.f32.mrb[21].mxu0 }
 0x11a   : > { %v754_v39 = vpop.f32.mrb[22].mxu0 }
 0x11b   : > { %v765_v40 = vadd.f32 %v910_v36, %v757_v37  ;;  %v1001_v41 = vpop.f32.mrb[23].mxu0 }
 0x11d   : > { %v771_v42 = vsel %vm770_vm3, %v765_v40, 0.0 }
 0x11e   : > { %v773_v43 = vrot.slane %v771_v42, 4  ;;  %v782_v44 = vmul.f32 %v771_v42, %v771_v42 }
 0x120   : > { %v774_v45 = vadd.f32 %v773_v43, %v771_v42  ;;  %v783_v46 = vrot.slane %v782_v44, 4 }
 0x122   : > { %v775_v47 = vrot.slane %v774_v45, 2  ;;  %v784_v48 = vadd.f32 %v783_v46, %v782_v44 }
 0x124   : > { %v776_v49 = vadd.f32 %v775_v47, %v774_v45  ;;  %v785_v50 = vrot.slane %v784_v48, 2 }
 0x126   : > { %v777_v51 = vrot.slane %v776_v49, 1  ;;  %v786_v52 = vadd.f32 %v785_v50, %v784_v48 }
 0x128   : > { %v778_v54 = vadd.f32 %v777_v51, %v776_v49  ;;  %v787_v55 = vrot.slane %v786_v52, 1 }
 0x12a   : > { %v779_v57 = vadd.f32 %v778_v54, %v772_v53  ;;  %v788_v58 = vadd.f32 %v787_v55, %v786_v52 }
 0x12c   : > { %780 = vst [vmem:[%s1286_s3] sm:$0x1] %v779_v57  ;;  %v789_v59 = vadd.f32 %v788_v58, %v781_v56 }
 0x12e   : > { %790 = vst [vmem:[%s1286_s3 + $0x1] sm:$0x1] %v789_v59 }
 0x12f PF: > { %s13_s16 = sadd.s32 1, %s1083_s16   ;;  %s1287_s12 = smov %s1075_s14 }
 0x130   : > { %p10_p9 = scmp.ge.s32.totalorder %s13_s16, 6   ;;  %s1288_s13 = smov %s1079_s15 }
 0x131   : > { %s1289_s14 = smov %s1292_s17  ;;  %s1290_s15 = smov %s1296_s18 }
 0x132   :  { %12 = sbr.rel (!%p10_p9) target bundleno = 3 (0x3), region = 83 }

// kernel: _lambda_.11
= control target key start
LH: loop header
LB: loop body
LE: loop exit
PB: predicated region body
PF: predicated region fallthrough
CT: control target
= control target key end

     0   :  { %s1507_s21 = smov 0   ;;  %s1509_s22 = smov 0   ;;  %s1721_s0 = inlined_call_operand.vmem [shape: f32[2,26,32], index: 0, kind: input, shape index: {}]   ;;  %s1722_s1 = inlined_call_operand.vmem [shape: bf16[11,32,128], index: 1, kind: input, shape index: {}]   ;;  %s1723_s2 = inlined_call_operand.vmem [shape: f32[1,128], index: 2, kind: input, shape index: {}]   ;;  %s1724_s3 = inlined_call_operand.vmem [shape: f32[2,128], index: 3, kind: input, shape index: {}]   ;;  %s1725_s4 = inlined_call_operand.vmem [shape: f32[1,128], index: 4, kind: input, shape index: {}]   ;;  %s1726_s5 = inlined_call_operand.vmem [shape: f32[1,128], index: 5, kind: input, shape index: {}]   ;;  %s1727_s6 = inlined_call_operand.vmem [shape: f32[2,16,128], index: 6, kind: output, shape index: {}]  }
   0x1   :  { %s1511_s23 = smov 0   ;;  %s1513_s24 = smov 0  }
   0x2   :  { %s1515_s25 = smov 0  }
   0x3 LB: > { %s25_s26 = sadd.s32 1, %s1460_s23  ;;  %s28_s27 = sadd.s32 1, %s1464_s24  ;;  %s1468_s25 = sphi %s1515_s25, %s16_s25   ;;  %s1464_s24 = sphi %s1513_s24, %s1731_s24   ;;  %s1460_s23 = sphi %s1511_s23, %s1730_s23   ;;  %s1456_s22 = sphi %s1509_s22, %s1729_s22   ;;  %s1452_s21 = sphi %s1507_s21, %s1728_s21  }
   0x4   : > { %p26_p0 = scmp.ge.s32.totalorder %s25_s26, 2  ;;  %p1140_p1 = scmp.ge.s32.totalorder %s1468_s25, 1 }
   0x5   : > { %p226_p2 = scmp.lt.s32.totalorder %s1468_s25, 5 }
   0x6   : > { %s1733_s26 = smov (%p26_p0, %s25_s26), 0  ;;  %s1735_s27 = smov (!%p26_p0, %s28_s27), %s1464_s24 }
   0x7   : > { %p227_p3 = pnand %p1140_p1, %p226_p2  ;;  %p30_p4 = scmp.ge.s32.totalorder %s1735_s27, 2 }
   0x8   : > { %v1406_v0 = vld [vmem:[%s1722_s1 + $0x10] sm:$0xff] (!%p227_p3)   ;;  %v1470_v1 = vmov (!%p227_p3), 0.0   ;;  %v1407_v2 = vld [vmem:[%s1722_s1] sm:$0xff] (!%p227_p3)   ;;  %v1408_v3 = vld [vmem:[%s1722_s1 + $0x18] sm:$0xff] (!%p227_p3)   ;;  %vm1471_vm0 = vmmov (!%p227_p3), 0   ;;  %p259_p5 = scmp.lt.s32.totalorder (!%p227_p3), %s1456_s22, 1 }
   0x9   : > { %s1737_s27 = smov (%p30_p4, %s1735_s27), 0  ;;  %230 = sbr.rel (%p227_p3) target bundleno = 286 (0x11e), region = 44 }
   0xa   : > { %1276 = vmatprep.subr.bf16.mxu0 (!%p227_p3), %v1470_v1  ;;  %1284 = vmatprep.subr.bf16.mxu1 (!%p227_p3), %v1470_v1  ;;  %v1409_v4 = vld [vmem:[%s1722_s1 + $0x8] sm:$0xff] (!%p227_p3)   ;;  %s1145_s12 = sshll.u32 (!%p227_p3), %s1452_s21, 3  ;;  %v1410_v5 = vld [vmem:[%s1722_s1 + $0x20] sm:$0xff] (!%p227_p3)   ;;  %vm302_vm1 = vcmask (!%p227_p3), 261120   ;;  %v1411_v8 = vld [vmem:[%s1722_s1 + $0x30] sm:$0xff] (!%p227_p3)   ;;  %p266_p6 = scmp.lt.s32.totalorder (!%p227_p3), %s1452_s21, 1 }
   0xb   : > { %1277 = vmatpush3.bf16.msra.mxu0 (!%p227_p3), %v1406_v0  ;;  %1280 = vmatprep.mubr.msk.bf16.mxu0 (!%p227_p3), %vm1471_vm0, %v1470_v1  ;;  %v1412_v11 = vld [vmem:[%s1722_s1 + $0x28] sm:$0xff] (!%p227_p3)   ;;  %v1413_v12 = vld [vmem:[%s1722_s1 + $0x38] sm:$0xff] (!%p227_p3)   ;;  %v1414_v16 = vld [vmem:[%s1722_s1 + $0x40] sm:$0xff] (!%p227_p3)  }
   0xc   : > { %1285 = vmatpush3.bf16.msra.mxu1 (!%p227_p3), %v1407_v2  ;;  %1278 = vmatprep.subr.bf16.mxu0 (!%p227_p3), %v1470_v1  ;;  %v1415_v18 = vld [vmem:[%s1722_s1 + $0x50] sm:$0xff] (!%p227_p3)   ;;  %v1416_v19 = vld [vmem:[%s1722_s1 + $0x48] sm:$0xff] (!%p227_p3)   ;;  %v1417_v20 = vld [vmem:[%s1722_s1 + $0x58] sm:$0xff] (!%p227_p3)  }
   0xd   : > { %1286 = vmatprep.subr.bf16.mxu1 (!%p227_p3), %v1470_v1  ;;  %1288 = vmatprep.mubr.msk.bf16.mxu1 (!%p227_p3), %vm1471_vm0, %v1470_v1  ;;  %v1418_v25 = vld [vmem:[%s1722_s1 + $0x60] sm:$0xff] (!%p227_p3)   ;;  %v1419_v26 = vld [vmem:[%s1722_s1 + $0x70] sm:$0xff] (!%p227_p3)   ;;  %v1420_v27 = vld [vmem:[%s1722_s1 + $0x68] sm:$0xff] (!%p227_p3)  }
   0xe   : > { %v1421_v28 = vld [vmem:[%s1722_s1 + $0x78] sm:$0xff] (!%p227_p3)   ;;  %v1422_v33 = vld [vmem:[%s1722_s1 + $0x80] sm:$0xff] (!%p227_p3)   ;;  %v1423_v34 = vld [vmem:[%s1722_s1 + $0x90] sm:$0xff] (!%p227_p3)  }
   0xf   : > { %1279 = vmatpush3.bf16.msra.mxu0 (!%p227_p3), %v1408_v3  ;;  %v1424_v35 = vld [vmem:[%s1722_s1 + $0x88] sm:$0xff] (!%p227_p3)   ;;  %v1425_v36 = vld [vmem:[%s1722_s1 + $0x98] sm:$0xff] (!%p227_p3)   ;;  %v1426_v41 = vld [vmem:[%s1722_s1 + $0xa0] sm:$0xff] (!%p227_p3)  }
  0x10   : > { %s1739_s22 = smov (!%p259_p5, %s1456_s22), 1  ;;  %1287 = vmatpush3.bf16.msra.mxu1 %v1409_v4  ;;  %1292 = vmatprep.subr.bf16.mxu0 %v1470_v1  ;;  %v1427_v42 = vld [vmem:[%s1722_s1 + $0xa8] sm:$0xff]   ;;  %v994_v45 = vld [vmem:[%s1724_s3] sm:$0x1]  ;;  %v996_v47 = vld [vmem:[%s1724_s3 + $0x1] sm:$0x1] }
  0x11   : > { %s1242_s13 = sshll.u32 %s1739_s22, 5  ;;  %1300 = vmatprep.subr.bf16.mxu1 %v1470_v1  ;;  %v1683_v46 = vmul.f32 0.03125, %v994_v45  ;;  %v997_v55 = vmul.f32 0.03125, %v996_v47  ;;  %s1741_s21 = smov (!%p266_p6, %s1452_s21), 1 }
  0x12   : > { %s263_s16 = scalar_lea.vmem %s1721_s0, %s1242_s13 }
  0x13   : > { %s1567_s17 = scalar_lea.vmem %s263_s16, %s1145_s12  ;;  %v998_v56 = vmul.f32 %v1683_v46, %v1683_v46  ;;  %s1143_s12 = sshll.u32 %s1739_s22, 1 }
  0x14   : > { %v1147_v6 = vld [vmem:[%s1567_s17 + $0x1] sm:$0xff]  ;;  %v1222_v38 = vld [vmem:[%s1567_s17 + $0x9] sm:$0xff]  ;;  %s269_s15 = sadd.s32 %s1143_s12, %s1741_s21 }
  0x15   : > { %v275_v7 = vld [vmem:[%s1567_s17] sm:$0xff]  ;;  %v284_v9 = vpack.c.bf16 %v1147_v6, %v1147_v6  ;;  %v1213_v37 = vld [vmem:[%s1567_s17 + $0x8] sm:$0xff]  ;;  %v859_v40 = vpack.c.bf16 %v1222_v38, %v1222_v38  ;;  %v999_v59 = vsub.f32 %v997_v55, %v998_v56  ;;  %s1144_s16 = sshll.u32 %s269_s15, 3 }
  0x16   : > { %v276_v10 = vpack.c.bf16 %v275_v7, %v275_v7  ;;  %v1159_v13 = vld [vmem:[%s1567_s17 + $0x2] sm:$0xff]  ;;  %v794_v39 = vpack.c.bf16 %v1213_v37, %v1213_v37  ;;  %v1231_v43 = vld [vmem:[%s1567_s17 + $0xa] sm:$0xff]  ;;  %s271_s22 = scalar_lea.vmem %s1727_s6, %s1144_s16 }
  0x17   : > { %1281 = vmatmul.mubr.msk.bf16.vlgmr.msra.gmra.mrb[0].mxu0 %vm302_vm1, %v284_v9  ;;  %v1168_v14 = vld [vmem:[%s1567_s17 + $0x3] sm:$0xff]  ;;  %v404_v15 = vpack.c.bf16 %v1159_v13, %v1159_v13  ;;  %v924_v44 = vpack.c.bf16 %v1231_v43, %v1231_v43  ;;  %v1000_v3 = vmax.f32 %v999_v59, 0.0 }
  0x18   : > { %1289 = vmatmul.mubr.msk.bf16.vlgmr.msra.gmra.mrb[0].mxu1 %vm302_vm1, %v276_v10  ;;  %1293 = vmatpush3.bf16.msra.mxu0 %v1410_v5  ;;  %v469_v17 = vpack.c.bf16 %v1168_v14, %v1168_v14  ;;  %v1177_v21 = vld [vmem:[%s1567_s17 + $0x4] sm:$0xff] }
  0x19   : > { %1301 = vmatpush3.bf16.msra.mxu1 %v1411_v8  ;;  %1294 = vmatprep.subr.bf16.mxu0 %v1470_v1  ;;  %v1186_v22 = vld [vmem:[%s1567_s17 + $0x5] sm:$0xff]  ;;  %v534_v23 = vpack.c.bf16 %v1177_v21, %v1177_v21  ;;  %v1002_v7 = vadd.f32 1e-05, %v1000_v3 }
  0x1a   : > { %1302 = vmatprep.subr.bf16.mxu1 %v1470_v1  ;;  %1296 = vmatprep.mubr.msk.bf16.mxu0 %vm1471_vm0, %v1470_v1  ;;  %v599_v24 = vpack.c.bf16 %v1186_v22, %v1186_v22  ;;  %v1195_v29 = vld [vmem:[%s1567_s17 + $0x6] sm:$0xff] }
  0x1b   : > { %1304 = vmatprep.mubr.msk.bf16.mxu1 %vm1471_vm0, %v1470_v1  ;;  %v1204_v30 = vld [vmem:[%s1567_s17 + $0x7] sm:$0xff]  ;;  %v664_v31 = vpack.c.bf16 %v1195_v29, %v1195_v29  ;;  %1428 = vrsqrt.f32 %v1002_v7  ;;  %v1001_v29 = vld [vmem:[%s1725_s4] sm:$0x1] }
  0x1c   : > { %1295 = vmatpush3.bf16.msra.mxu0 %v1412_v11  ;;  %v729_v32 = vpack.c.bf16 %v1204_v30, %v1204_v30  ;;  %v1009_v30 = vlaneseq }
  0x1d   : > { %1303 = vmatpush3.bf16.msra.mxu1 %v1413_v12  ;;  %1308 = vmatprep.subr.bf16.mxu0 %v1470_v1 }
  0x1e   : > { %1316 = vmatprep.subr.bf16.mxu1 %v1470_v1  ;;  %v1010_v37 = vshrl.u32 %v1009_v30, 7 }
  0x1f   : > { %1297 = vmatmul.mubr.msk.bf16.vlgmr.msra.gmra.mrb[4].mxu0 %vm302_vm1, %v404_v15 }
  0x20   : > { %1305 = vmatmul.mubr.msk.bf16.vlgmr.msra.gmra.mrb[4].mxu1 %vm302_vm1, %v469_v17  ;;  %1309 = vmatpush3.bf16.msra.mxu0 %v1414_v16  ;;  %v1011_v45 = vsub.s32 0, %v1010_v37 }
  0x21   : > { %1317 = vmatpush3.bf16.msra.mxu1 %v1415_v18  ;;  %1310 = vmatprep.subr.bf16.mxu0 %v1470_v1 }
  0x22   : > { %1318 = vmatprep.subr.bf16.mxu1 %v1470_v1  ;;  %1312 = vmatprep.mubr.msk.bf16.mxu0 %vm1471_vm0, %v1470_v1 }
  0x23   : > { %1320 = vmatprep.mubr.msk.bf16.mxu1 %vm1471_vm0, %v1470_v1 }
  0x24   : > { %1311 = vmatpush3.bf16.msra.mxu0 %v1416_v19 }
  0x25   : > { %1319 = vmatpush3.bf16.msra.mxu1 %v1417_v20  ;;  %1324 = vmatprep.subr.bf16.mxu0 %v1470_v1 }
  0x26   : > { %1332 = vmatprep.subr.bf16.mxu1 %v1470_v1 }
  0x27   : > { %1313 = vmatmul.mubr.msk.bf16.vlgmr.msra.gmra.mrb[8].mxu0 %vm302_vm1, %v534_v23 }
  0x28   : > { %1321 = vmatmul.mubr.msk.bf16.vlgmr.msra.gmra.mrb[8].mxu1 %vm302_vm1, %v599_v24  ;;  %1325 = vmatpush3.bf16.msra.mxu0 %v1418_v25 }
  0x29   : > { %1333 = vmatpush3.bf16.msra.mxu1 %v1419_v26  ;;  %1326 = vmatprep.subr.bf16.mxu0 %v1470_v1 }
  0x2a   : > { %1334 = vmatprep.subr.bf16.mxu1 %v1470_v1  ;;  %1328 = vmatprep.mubr.msk.bf16.mxu0 %vm1471_vm0, %v1470_v1 }
  0x2b   : > { %1336 = vmatprep.mubr.msk.bf16.mxu1 %vm1471_vm0, %v1470_v1 }
  0x2c   : > { %1327 = vmatpush3.bf16.msra.mxu0 %v1420_v27 }
  0x2d   : > { %1335 = vmatpush3.bf16.msra.mxu1 %v1421_v28  ;;  %1340 = vmatprep.subr.bf16.mxu0 %v1470_v1  ;;  %v1429_v28 = vpop.eup %1428 }
  0x2e   : > { %1348 = vmatprep.subr.bf16.mxu1 %v1470_v1 }
  0x2f   : > { %1329 = vmatmul.mubr.msk.bf16.vlgmr.msra.gmra.mrb[12].mxu0 %vm302_vm1, %v664_v31  ;;  %v1004_v31 = vmul.f32 %v1429_v28, %v1001_v29 }
  0x30   : > { %1337 = vmatmul.mubr.msk.bf16.vlgmr.msra.gmra.mrb[12].mxu1 %vm302_vm1, %v729_v32  ;;  %1341 = vmatpush3.bf16.msra.mxu0 %v1422_v33 }
  0x31   : > { %1349 = vmatpush3.bf16.msra.mxu1 %v1423_v34  ;;  %1342 = vmatprep.subr.bf16.mxu0 %v1470_v1  ;;  %v1006_v43 = vmul.f32 %v1004_v31, %v1683_v46 }
  0x32   : > { %1350 = vmatprep.subr.bf16.mxu1 %v1470_v1  ;;  %1344 = vmatprep.mubr.msk.bf16.mxu0 %vm1471_vm0, %v1470_v1 }
  0x33   : > { %1352 = vmatprep.mubr.msk.bf16.mxu1 %vm1471_vm0, %v1470_v1 }
  0x34   : > { %1343 = vmatpush3.bf16.msra.mxu0 %v1424_v35 }
  0x35   : > { %1351 = vmatpush3.bf16.msra.mxu1 %v1425_v36  ;;  %1356 = vmatprep.subr.bf16.mxu0 %v1470_v1 }
  0x37   : > { %1345 = vmatmul.mubr.msk.bf16.vlgmr.msra.gmra.mrb[16].mxu0 %vm302_vm1, %v794_v39 }
  0x38   : > { %1353 = vmatmul.mubr.msk.bf16.vlgmr.msra.gmra.mrb[16].mxu1 %vm302_vm1, %v859_v40  ;;  %1357 = vmatpush3.bf16.msra.mxu0 %v1426_v41 }
  0x39   : > { %1360 = vmatprep.mubr.msk.bf16.mxu0 %vm1471_vm0, %v1470_v1  ;;  %1358 = vmatprep.subr.bf16.mxu0 %v1470_v1 }
  0x3c   : > { %1359 = vmatpush3.bf16.msra.mxu0 %v1427_v42 }
  0x3f   : > { %1361 = vmatmul.mubr.msk.bf16.vlgmr.msra.gmra.mrb[20].mxu0 %vm302_vm1, %v924_v44  ;;  %v1005_v44 = vld [vmem:[%s1726_s5] sm:$0x1] }
  0x40   : > { %v1007_v47 = vsub.f32 %v1005_v44, %v1006_v43 }
  0x42   : > { %v1019_v46 = vrot.slane %v1007_v47, %v1011_v45 }
  0xea   : > { %v340_v48 = vpop.f32.mrb[0].mxu0 }
  0xeb   : > { %v395_v49 = vpop.f32.mrb[0].mxu1  ;;  %v1282_v50 = vpop.f32.mrb[1].mxu0 }
  0xec   : > { %v396_v51 = vadd.f32 %v395_v49, %v340_v48  ;;  %v1290_v52 = vpop.f32.mrb[1].mxu1  ;;  %v343_v53 = vpop.f32.mrb[2].mxu0  ;;  %v1239_v49 = vld [vmem:[%s1723_s2] ss:$0 sm:$0xff] }
  0xed   : > { %v398_v54 = vpop.f32.mrb[2].mxu1  ;;  %v1283_v57 = vpop.f32.mrb[3].mxu0 }
  0xee   : > { %v1291_v58 = vpop.f32.mrb[3].mxu1 }
  0xf2   : > { %v459_v60 = vpop.f32.mrb[4].mxu0 }
  0xf3   : > { %v524_v61 = vpop.f32.mrb[4].mxu1  ;;  %v465_v62 = vadd.f32 %v459_v60, %v396_v51  ;;  %v1298_v63 = vpop.f32.mrb[5].mxu0  ;;  %v1012_v51 = vrot.slane %v1004_v31, %v1011_v45 }
  0xf4   : > { %v1306_v0 = vpop.f32.mrb[5].mxu1  ;;  %v462_v1 = vpop.f32.mrb[6].mxu0 }
  0xf5   : > { %v527_v2 = vpop.f32.mrb[6].mxu1  ;;  %v530_v4 = vadd.f32 %v524_v61, %v465_v62  ;;  %v1299_v5 = vpop.f32.mrb[7].mxu0 }
  0xf6   : > { %v1307_v6 = vpop.f32.mrb[7].mxu1 }
  0xfa   : > { %v589_v8 = vpop.f32.mrb[8].mxu0 }
  0xfb   : > { %v654_v9 = vpop.f32.mrb[8].mxu1  ;;  %v595_v10 = vadd.f32 %v589_v8, %v530_v4  ;;  %v1314_v11 = vpop.f32.mrb[9].mxu0 }
  0xfc   : > { %v1322_v12 = vpop.f32.mrb[9].mxu1  ;;  %v592_v13 = vpop.f32.mrb[10].mxu0 }
  0xfd   : > { %v657_v14 = vpop.f32.mrb[10].mxu1  ;;  %v660_v15 = vadd.f32 %v654_v9, %v595_v10  ;;  %v1315_v16 = vpop.f32.mrb[11].mxu0 }
  0xfe   : > { %v1323_v17 = vpop.f32.mrb[11].mxu1 }
 0x102   : > { %v719_v18 = vpop.f32.mrb[12].mxu0 }
 0x103   : > { %v784_v19 = vpop.f32.mrb[12].mxu1  ;;  %v725_v20 = vadd.f32 %v719_v18, %v660_v15  ;;  %v1330_v21 = vpop.f32.mrb[13].mxu0 }
 0x104   : > { %v1338_v22 = vpop.f32.mrb[13].mxu1  ;;  %v722_v23 = vpop.f32.mrb[14].mxu0 }
 0x105   : > { %v787_v24 = vpop.f32.mrb[14].mxu1  ;;  %v790_v25 = vadd.f32 %v784_v19, %v725_v20  ;;  %v1331_v26 = vpop.f32.mrb[15].mxu0 }
 0x106   : > { %v1339_v27 = vpop.f32.mrb[15].mxu1 }
 0x10a   : > { %v849_v32 = vpop.f32.mrb[16].mxu0 }
 0x10b   : > { %v914_v33 = vpop.f32.mrb[16].mxu1  ;;  %v855_v34 = vadd.f32 %v849_v32, %v790_v25  ;;  %v1346_v35 = vpop.f32.mrb[17].mxu0 }
 0x10c   : > { %v1354_v36 = vpop.f32.mrb[17].mxu1  ;;  %v852_v38 = vpop.f32.mrb[18].mxu0 }
 0x10d   : > { %v917_v39 = vpop.f32.mrb[18].mxu1  ;;  %v920_v40 = vadd.f32 %v914_v33, %v855_v34  ;;  %v1347_v41 = vpop.f32.mrb[19].mxu0 }
 0x10e   : > { %v1355_v42 = vpop.f32.mrb[19].mxu1 }
 0x112   : > { %v979_v48 = vpop.f32.mrb[20].mxu0 }
 0x113   : > { %v985_v50 = vadd.f32 %v979_v48, %v920_v40  ;;  %v1362_v52 = vpop.f32.mrb[21].mxu0 }
 0x114   : > { %v982_v53 = vpop.f32.mrb[22].mxu0 }
 0x115   : > { %v993_v54 = vadd.f32 %v1239_v49, %v985_v50  ;;  %v1363_v55 = vpop.f32.mrb[23].mxu0 }
 0x117   : > { %v1014_v56 = vmul.f32 %v1012_v51, %v993_v54 }
 0x119   : > { %v1021_v57 = vadd.f32 %v1019_v46, %v1014_v56 }
 0x11b   : > { %v1022_v58 = vmax.f32 %v1021_v57, 0.0 }
 0x11d   : > { %1023 = vst [vmem:[%s271_s22] sm:$0xff] %v1022_v58 }
 0x11e PF: > { %s16_s25 = sadd.s32 1, %s1468_s25   ;;  %s1728_s21 = smov %s1460_s23 }
 0x11f   : > { %p13_p7 = scmp.ge.s32.totalorder %s16_s25, 6   ;;  %s1729_s22 = smov %s1464_s24 }
 0x120   : > { %s1730_s23 = smov %s1733_s26  ;;  %s1731_s24 = smov %s1737_s27 }
 0x121   :  { %15 = sbr.rel (!%p13_p7) target bundleno = 3 (0x3), region = 95 }

</bundles_post_ra>
